<compile_context>
chip_gen: v7x
topology: tpu7x:2x2x1
jax: 0.10.0
libtpu: 0.0.40
codegen_flags: <defaults>
</compile_context>

<pallas_src>
import math

import jax
import jax.numpy as jnp
from jax import lax
from jax.experimental import pallas as pl
from jax.experimental.pallas import tpu as pltpu


# ----------------------------------------------------------------------------
# Pallas kernel: AttentionalBiRNN (fused bi-GRU + masked attention pooling)
# ----------------------------------------------------------------------------
def _make_birnn_kernel(T, B, H):
    """T: time steps, B: (padded, multiple of 8) batch, H: hidden size."""
    H2, H3, H5, H6 = 2 * H, 3 * H, 5 * H, 6 * H

    def kernel(x2_ref, mask_ref, wih_ref, whh_ref, bx_ref, bhnf_ref, bhnb_ref,
               lin_w_ref, lin_b_ref, attw_ref, out_ref):
        x2 = x2_ref[...]                  # (T*B, I), time-major rows t*B + b
        mask = mask_ref[...]              # (T*B, 1), 1.0 where t < len[b]

        # ---- hoisted fused input projection: ONE GEMM for both directions ---
        xp = jnp.dot(x2, wih_ref[...],
                     preferred_element_type=jnp.float32) + bx_ref[...]  # (T*B,6H)

        whh = whh_ref[...]                # (2H, 6H) block-diagonal
        bhn_f = bhnf_ref[...]             # (1, H)
        bhn_b = bhnb_ref[...]             # (1, H)

        # ---- fused fwd/bwd recurrence (fully unrolled, independent chains) --
        h = jnp.zeros((B, H2), jnp.float32)          # [h_fwd | h_bwd]
        hf = [None] * T
        hb = [None] * T
        for i in range(T):
            j = T - 1 - i                            # backward chain time index
            u = jnp.dot(h, whh, preferred_element_type=jnp.float32)   # (B, 6H)
            xpf = xp[i * B:(i + 1) * B, 0:H3]        # fwd gates at time i
            xpb = xp[j * B:(j + 1) * B, H3:H6]       # bwd gates at time j

            sf = jax.nn.sigmoid(xpf[:, 0:H2] + u[:, 0:H2])       # [r_f | z_f]
            sb = jax.nn.sigmoid(xpb[:, 0:H2] + u[:, H3:H5])      # [r_b | z_b]
            nf = jnp.tanh(xpf[:, H2:H3] + sf[:, 0:H] * (u[:, H2:H3] + bhn_f))
            nb = jnp.tanh(xpb[:, H2:H3] + sb[:, 0:H] * (u[:, H5:H6] + bhn_b))

            hf_new = nf + sf[:, H:H2] * (h[:, 0:H] - nf)         # (1-z)n + z h
            hb_cand = nb + sb[:, H:H2] * (h[:, H:H2] - nb)
            # backward state frozen on padded steps (packed-sequence semantics)
            m = mask[j * B:(j + 1) * B, :]
            hb_new = h[:, H:H2] + m * (hb_cand - h[:, H:H2])

            h = jnp.concatenate([hf_new, hb_new], axis=1)
            hf[i] = hf_new
            hb[j] = hb_new

        # ---- enc assembled once in registers (no scratch round-trip) --------
        enc = jnp.concatenate(
            [jnp.concatenate([hf[t], hb[t]], axis=1) for t in range(T)],
            axis=0)                                              # (T*B, 2H)

        # ---- attention pooling ----------------------------------------------
        emb = jnp.tanh(jnp.dot(enc, lin_w_ref[...],
                               preferred_element_type=jnp.float32) + lin_b_ref[...])
        # N=1 matmul -> broadcast multiply + lane reduce (VPU/XLU, no MXU).
        logit = jnp.sum(emb * attw_ref[...], axis=-1, keepdims=True)   # (T*B, 1)

        # Stable masked softmax: per-batch-column max over valid steps,
        # clamped at 0 so fully-masked (padded-batch) columns stay finite.
        neg = jnp.float32(-1e30)
        amax = jnp.zeros((B, 1), jnp.float32)
        for t in range(T):
            lt = logit[t * B:(t + 1) * B, :]
            mt = mask[t * B:(t + 1) * B, :]
            amax = jnp.maximum(amax, jnp.where(mt > 0.5, lt, neg))

        # Time reduction: T-1 static-slice VPU adds (selector matmul removed).
        num = jnp.zeros((B, H2), jnp.float32)
        den = jnp.zeros((B, 1), jnp.float32)
        for t in range(T):
            lt = logit[t * B:(t + 1) * B, :]
            mt = mask[t * B:(t + 1) * B, :]
            et = jnp.exp(lt - amax) * mt
            num = num + et * enc[t * B:(t + 1) * B, :]
            den = den + et

        # epsilon rescaled by exp(-amax) => identical to e/(sum e + 1e-4).
        d = den + 1e-4 * jnp.exp(-amax)
        inv = pl.reciprocal(d, approx=True)        # EUP rcp
        inv = inv * (2.0 - d * inv)                # one Newton step -> f32 accuracy
        out_ref[...] = num * inv

    return kernel


def _pack_gru_pair(p, H):
    """Pack both directions: fused Wih (I,6H), block-diag Whh (2H,6H), biases."""
    wih_cat = jnp.concatenate([p["wih_f"][0], p["wih_f"][1], p["wih_f"][2],
                               p["wih_b"][0], p["wih_b"][1], p["wih_b"][2]], axis=1)
    bx_cat = jnp.concatenate([p["bih_f"][0] + p["bhh_f"][0],
                              p["bih_f"][1] + p["bhh_f"][1],
                              p["bih_f"][2],
                              p["bih_b"][0] + p["bhh_b"][0],
                              p["bih_b"][1] + p["bhh_b"][1],
                              p["bih_b"][2]], axis=1)              # (1, 6H)
    whh_fp = jnp.concatenate([p["whh_f"][0], p["whh_f"][1], p["whh_f"][2]], axis=1)
    whh_bp = jnp.concatenate([p["whh_b"][0], p["whh_b"][1], p["whh_b"][2]], axis=1)
    z = jnp.zeros((H, 3 * H), jnp.float32)
    whh_bd = jnp.concatenate([jnp.concatenate([whh_fp, z], axis=1),
                              jnp.concatenate([z, whh_bp], axis=1)], axis=0)  # (2H,6H)
    return wih_cat, whh_bd, bx_cat, p["bhh_f"][2], p["bhh_b"][2]


def attentional_birnn(x, lens, params):
    """x: (T, B, inp) f32 time-major; lens: (B,) int; -> (B, 2*hid) f32."""
    T, B, I = x.shape
    H = params["whh_f"].shape[2]
    Bp = max(8, ((B + 7) // 8) * 8)                 # pad batch to sublane multiple

    x_pad = jnp.zeros((T, Bp, I), jnp.float32).at[:, :B, :].set(x.astype(jnp.float32))
    lens_pad = jnp.zeros((Bp,), jnp.int32).at[:B].set(lens.astype(jnp.int32))

    x2 = x_pad.reshape(T * Bp, I)                   # row t*Bp + b
    mask2 = (jnp.arange(T)[:, None] < lens_pad[None, :]).astype(jnp.float32)
    mask2 = mask2.reshape(T * Bp, 1)

    wih_cat, whh_bd, bx_cat, bhn_f, bhn_b = _pack_gru_pair(params, H)
    att_row = params["att_w"].reshape(1, 2 * H)     # (1, 2H) row for broadcast mul

    args = (x2, mask2, wih_cat, whh_bd, bx_cat, bhn_f, bhn_b,
            params["lin_w"], params["lin_b"], att_row)

    out = pl.pallas_call(
        _make_birnn_kernel(T, Bp, H),
        out_shape=jax.ShapeDtypeStruct((Bp, 2 * H), jnp.float32),
        in_specs=[pl.BlockSpec(memory_space=pltpu.MemorySpace.VMEM)] * len(args),
        out_specs=pl.BlockSpec(memory_space=pltpu.MemorySpace.VMEM),
    )(*args)
    return out[:B]


# ----------------------------------------------------------------------------
# HAN forward driver (embedding / reorder / final Linear stay in plain JAX)
# ----------------------------------------------------------------------------
def han_forward(batch_reviews, sent_order, ls, lr, hp, birnn):
    # F.dropout is inactive in eval mode -> identity.
    emb_w = hp["embed"][batch_reviews]                         # (n_sents, Tw, E)
    sent_embs = birnn(jnp.transpose(emb_w, (1, 0, 2)), ls, hp["word"])   # (n_sents, 2H)
    # _reorder_sent: prepend a zero row, gather by sent_order (0 == pad).
    padded = jnp.concatenate(
        [jnp.zeros((1, sent_embs.shape[1]), sent_embs.dtype), sent_embs], axis=0)
    n_docs, max_sents = sent_order.shape
    revs = padded[sent_order.reshape(-1)].reshape(n_docs, max_sents, -1)
    doc_embs = birnn(jnp.transpose(revs, (1, 0, 2)), lr, hp["sent"])     # (n_docs, 2H)
    return doc_embs @ hp["out_w"] + hp["out_b"]                # (n_docs, num_class)


# ----------------------------------------------------------------------------
# Pure-JAX reference (same math) for verification
# ----------------------------------------------------------------------------
def _gru_dir_ref(x, wih, whh, bih, bhh, lens, reverse):
    T, B, _ = x.shape
    H = whh.shape[2]

    def step(h, inp):
        x_t, t = inp
        r = jax.nn.sigmoid(x_t @ wih[0] + bih[0] + h @ whh[0] + bhh[0])
        z = jax.nn.sigmoid(x_t @ wih[1] + bih[1] + h @ whh[1] + bhh[1])
        n = jnp.tanh(x_t @ wih[2] + bih[2] + r * (h @ whh[2] + bhh[2]))
        h_new = (1.0 - z) * n + z * h
        if reverse:
            valid = (t < lens[:, None]).astype(x.dtype)
            h_new = valid * h_new + (1.0 - valid) * h
        return h_new, h_new

    ts = jnp.arange(T)
    xs = (x[::-1], ts[::-1]) if reverse else (x, ts)
    _, hs = lax.scan(step, jnp.zeros((B, H), x.dtype), xs)
    return hs[::-1] if reverse else hs


def attentional_birnn_ref(x, lens, params):
    T, B, _ = x.shape
    fwd = _gru_dir_ref(x, params["wih_f"], params["whh_f"], params["bih_f"],
                       params["bhh_f"], lens, False)
    bwd = _gru_dir_ref(x, params["wih_b"], params["whh_b"], params["bih_b"],
                       params["bhh_b"], lens, True)
    enc = jnp.concatenate([fwd, bwd], axis=-1)                  # (T, B, 2H)
    emb = jnp.tanh(enc @ params["lin_w"] + params["lin_b"])
    logits = (emb @ params["att_w"])[..., 0]                    # (T, B)
    mask = (jnp.arange(T)[:, None] < lens[None, :]).astype(jnp.float32)
    e = jnp.exp(logits) * mask
    s = e.sum(0, keepdims=True) + 1e-4
    att = e / s
    return (att[..., None] * enc).sum(0)                        # (B, 2H)


# ----------------------------------------------------------------------------
if __name__ == "__main__":
    ntoken, num_class, emb_size, hid_size = 50, 5, 16, 16
    Tw, n_sents = 8, 6            # max words per sentence, total sentences
    n_docs, Ts = 2, 4             # documents, max sentences per document

    key = jax.random.PRNGKey(0)
    keys = iter(jax.random.split(key, 40))
    s = 1.0 / math.sqrt(hid_size)

    def u(shape):
        return jax.random.uniform(next(keys), shape, jnp.float32, -s, s)

    def gru_params(inp, hid):
        return {
            "wih_f": u((3, inp, hid)), "whh_f": u((3, hid, hid)),
            "bih_f": u((3, 1, hid)),   "bhh_f": u((3, 1, hid)),
            "wih_b": u((3, inp, hid)), "whh_b": u((3, hid, hid)),
            "bih_b": u((3, 1, hid)),   "bhh_b": u((3, 1, hid)),
            "lin_w": u((2 * hid, 2 * hid)), "lin_b": u((1, 2 * hid)),
            "att_w": u((2 * hid, 1)),
        }

    embed = jax.random.normal(next(keys), (ntoken, emb_size), jnp.float32)
    embed = embed.at[0].set(0.0)                       # padding_idx = 0
    hp = {
        "embed": embed,
        "word": gru_params(emb_size, hid_size),
        "sent": gru_params(2 * hid_size, hid_size),
        "out_w": u((2 * hid_size, num_class)),
        "out_b": u((1, num_class)),
    }

    ls = jnp.array([8, 7, 5, 5, 3, 2], jnp.int32)      # word lengths (descending)
    lr = jnp.array([4, 2], jnp.int32)                  # sentence counts (descending)
    tok = jax.random.randint(next(keys), (n_sents, Tw), 1, ntoken)
    wmask = jnp.arange(Tw)[None, :] < ls[:, None]
    batch_reviews = jnp.where(wmask, tok, 0)
    # doc 0 -> sentences 1..4 (1-indexed), doc 1 -> sentences 5,6 (+ padding 0)
    sent_order = jnp.array([[1, 2, 3, 4], [5, 6, 0, 0]], jnp.int32)

    out = jax.block_until_ready(
        han_forward(batch_reviews, sent_order, ls, lr, hp, attentional_birnn))
    ref = han_forward(batch_reviews, sent_order, ls, lr, hp, attentional_birnn_ref)

    assert out.shape == (n_docs, num_class), out.shape
    assert jnp.allclose(out, ref, atol=1e-3, rtol=1e-3), (out, ref)
    print("KERNEL_OK")
</pallas_src>

<mosaic_0001>
module attributes {stable_mosaic.version = 11 : i64} {
  func.func @kernel(%arg0: memref<64x16xf32, #tpu.memory_space<vmem>>, %arg1: memref<64x1xf32, #tpu.memory_space<vmem>>, %arg2: memref<16x96xf32, #tpu.memory_space<vmem>>, %arg3: memref<32x96xf32, #tpu.memory_space<vmem>>, %arg4: memref<1x96xf32, #tpu.memory_space<vmem>>, %arg5: memref<1x16xf32, #tpu.memory_space<vmem>>, %arg6: memref<1x16xf32, #tpu.memory_space<vmem>>, %arg7: memref<32x32xf32, #tpu.memory_space<vmem>>, %arg8: memref<1x32xf32, #tpu.memory_space<vmem>>, %arg9: memref<1x32xf32, #tpu.memory_space<vmem>>, %arg10: memref<8x32xf32, #tpu.memory_space<vmem>>) attributes {dimension_semantics = [], scalar_prefetch = 0 : i64, scratch_operands = 0 : i64, tpu.core_type = #tpu.core_type<tc>} {
    %c0 = arith.constant 0 : index
    %c0_0 = arith.constant 0 : index
    %0 = vector.load %arg0[%c0, %c0_0] : memref<64x16xf32, #tpu.memory_space<vmem>>, vector<64x16xf32>
    %c0_1 = arith.constant 0 : index
    %c0_2 = arith.constant 0 : index
    %1 = vector.load %arg1[%c0_1, %c0_2] : memref<64x1xf32, #tpu.memory_space<vmem>>, vector<64x1xf32>
    %c0_3 = arith.constant 0 : index
    %c0_4 = arith.constant 0 : index
    %2 = vector.load %arg2[%c0_3, %c0_4] : memref<16x96xf32, #tpu.memory_space<vmem>>, vector<16x96xf32>
    %cst = arith.constant dense<0.000000e+00> : vector<64x96xf32>
    %3 = tpu.matmul %0, %2, %cst {dimension_numbers = #tpu.dot_dimension_numbers<[1], [0], [0], [1], [0, 0, 1, 1], [], []>} : vector<64x16xf32>, vector<16x96xf32>, vector<64x96xf32> -> vector<64x96xf32>
    %c0_5 = arith.constant 0 : index
    %c0_6 = arith.constant 0 : index
    %4 = vector.load %arg4[%c0_5, %c0_6] : memref<1x96xf32, #tpu.memory_space<vmem>>, vector<1x96xf32>
    %5 = vector.broadcast %4 : vector<1x96xf32> to vector<64x96xf32>
    %6 = arith.addf %3, %5 : vector<64x96xf32>
    %c0_7 = arith.constant 0 : index
    %c0_8 = arith.constant 0 : index
    %7 = vector.load %arg3[%c0_7, %c0_8] : memref<32x96xf32, #tpu.memory_space<vmem>>, vector<32x96xf32>
    %c0_9 = arith.constant 0 : index
    %c0_10 = arith.constant 0 : index
    %8 = vector.load %arg5[%c0_9, %c0_10] : memref<1x16xf32, #tpu.memory_space<vmem>>, vector<1x16xf32>
    %c0_11 = arith.constant 0 : index
    %c0_12 = arith.constant 0 : index
    %9 = vector.load %arg6[%c0_11, %c0_12] : memref<1x16xf32, #tpu.memory_space<vmem>>, vector<1x16xf32>
    %cst_13 = arith.constant 0.000000e+00 : f32
    %10 = vector.broadcast %cst_13 : f32 to vector<8x32xf32>
    %cst_14 = arith.constant dense<0.000000e+00> : vector<8x96xf32>
    %11 = tpu.matmul %10, %7, %cst_14 {dimension_numbers = #tpu.dot_dimension_numbers<[1], [0], [0], [1], [0, 0, 1, 1], [], []>} : vector<8x32xf32>, vector<32x96xf32>, vector<8x96xf32> -> vector<8x96xf32>
    %12 = vector.extract_strided_slice %6 {offsets = [0, 0], sizes = [8, 48], strides = [1, 1]} : vector<64x96xf32> to vector<8x48xf32>
    %13 = vector.extract_strided_slice %6 {offsets = [56, 48], sizes = [8, 48], strides = [1, 1]} : vector<64x96xf32> to vector<8x48xf32>
    %14 = vector.extract_strided_slice %12 {offsets = [0, 0], sizes = [8, 32], strides = [1, 1]} : vector<8x48xf32> to vector<8x32xf32>
    %15 = vector.extract_strided_slice %11 {offsets = [0, 0], sizes = [8, 32], strides = [1, 1]} : vector<8x96xf32> to vector<8x32xf32>
    %16 = arith.addf %14, %15 : vector<8x32xf32>
    %17 = arith.negf %16 : vector<8x32xf32>
    %18 = math.exp %17 : vector<8x32xf32>
    %cst_15 = arith.constant 1.000000e+00 : f32
    %19 = vector.broadcast %cst_15 : f32 to vector<8x32xf32>
    %20 = arith.addf %19, %18 : vector<8x32xf32>
    %21 = arith.divf %19, %20 : vector<8x32xf32>
    %22 = vector.extract_strided_slice %13 {offsets = [0, 0], sizes = [8, 32], strides = [1, 1]} : vector<8x48xf32> to vector<8x32xf32>
    %23 = vector.extract_strided_slice %11 {offsets = [0, 48], sizes = [8, 32], strides = [1, 1]} : vector<8x96xf32> to vector<8x32xf32>
    %24 = arith.addf %22, %23 : vector<8x32xf32>
    %25 = arith.negf %24 : vector<8x32xf32>
    %26 = math.exp %25 : vector<8x32xf32>
    %cst_16 = arith.constant 1.000000e+00 : f32
    %27 = vector.broadcast %cst_16 : f32 to vector<8x32xf32>
    %28 = arith.addf %27, %26 : vector<8x32xf32>
    %29 = arith.divf %27, %28 : vector<8x32xf32>
    %30 = vector.extract_strided_slice %12 {offsets = [0, 32], sizes = [8, 16], strides = [1, 1]} : vector<8x48xf32> to vector<8x16xf32>
    %31 = vector.extract_strided_slice %21 {offsets = [0, 0], sizes = [8, 16], strides = [1, 1]} : vector<8x32xf32> to vector<8x16xf32>
    %32 = vector.extract_strided_slice %11 {offsets = [0, 32], sizes = [8, 16], strides = [1, 1]} : vector<8x96xf32> to vector<8x16xf32>
    %33 = vector.broadcast %8 : vector<1x16xf32> to vector<8x16xf32>
    %34 = arith.addf %32, %33 : vector<8x16xf32>
    %35 = arith.mulf %31, %34 : vector<8x16xf32>
    %36 = arith.addf %30, %35 : vector<8x16xf32>
    %37 = math.tanh %36 : vector<8x16xf32>
    %38 = vector.extract_strided_slice %13 {offsets = [0, 32], sizes = [8, 16], strides = [1, 1]} : vector<8x48xf32> to vector<8x16xf32>
    %39 = vector.extract_strided_slice %29 {offsets = [0, 0], sizes = [8, 16], strides = [1, 1]} : vector<8x32xf32> to vector<8x16xf32>
    %40 = vector.extract_strided_slice %11 {offsets = [0, 80], sizes = [8, 16], strides = [1, 1]} : vector<8x96xf32> to vector<8x16xf32>
    %41 = vector.broadcast %9 : vector<1x16xf32> to vector<8x16xf32>
    %42 = arith.addf %40, %41 : vector<8x16xf32>
    %43 = arith.mulf %39, %42 : vector<8x16xf32>
    %44 = arith.addf %38, %43 : vector<8x16xf32>
    %45 = math.tanh %44 : vector<8x16xf32>
    %46 = vector.extract_strided_slice %21 {offsets = [0, 16], sizes = [8, 16], strides = [1, 1]} : vector<8x32xf32> to vector<8x16xf32>
    %47 = vector.extract_strided_slice %10 {offsets = [0, 0], sizes = [8, 16], strides = [1, 1]} : vector<8x32xf32> to vector<8x16xf32>
    %48 = arith.subf %47, %37 : vector<8x16xf32>
    %49 = arith.mulf %46, %48 : vector<8x16xf32>
    %50 = arith.addf %37, %49 : vector<8x16xf32>
    %51 = vector.extract_strided_slice %29 {offsets = [0, 16], sizes = [8, 16], strides = [1, 1]} : vector<8x32xf32> to vector<8x16xf32>
    %52 = vector.extract_strided_slice %10 {offsets = [0, 16], sizes = [8, 16], strides = [1, 1]} : vector<8x32xf32> to vector<8x16xf32>
    %53 = arith.subf %52, %45 : vector<8x16xf32>
    %54 = arith.mulf %51, %53 : vector<8x16xf32>
    %55 = arith.addf %45, %54 : vector<8x16xf32>
    %56 = vector.extract_strided_slice %1 {offsets = [56, 0], sizes = [8, 1], strides = [1, 1]} : vector<64x1xf32> to vector<8x1xf32>
    %57 = vector.extract_strided_slice %10 {offsets = [0, 16], sizes = [8, 16], strides = [1, 1]} : vector<8x32xf32> to vector<8x16xf32>
    %58 = vector.extract_strided_slice %10 {offsets = [0, 16], sizes = [8, 16], strides = [1, 1]} : vector<8x32xf32> to vector<8x16xf32>
    %59 = arith.subf %55, %58 : vector<8x16xf32>
    %60 = vector.broadcast %56 : vector<8x1xf32> to vector<8x16xf32>
    %61 = arith.mulf %60, %59 : vector<8x16xf32>
    %62 = arith.addf %57, %61 : vector<8x16xf32>
    %63 = tpu.concatenate %50, %62 in 1 : vector<8x16xf32>, vector<8x16xf32> -> vector<8x32xf32>
    %cst_17 = arith.constant dense<0.000000e+00> : vector<8x96xf32>
    %64 = tpu.matmul %63, %7, %cst_17 {dimension_numbers = #tpu.dot_dimension_numbers<[1], [0], [0], [1], [0, 0, 1, 1], [], []>} : vector<8x32xf32>, vector<32x96xf32>, vector<8x96xf32> -> vector<8x96xf32>
    %65 = vector.extract_strided_slice %6 {offsets = [8, 0], sizes = [8, 48], strides = [1, 1]} : vector<64x96xf32> to vector<8x48xf32>
    %66 = vector.extract_strided_slice %6 {offsets = [48, 48], sizes = [8, 48], strides = [1, 1]} : vector<64x96xf32> to vector<8x48xf32>
    %67 = vector.extract_strided_slice %65 {offsets = [0, 0], sizes = [8, 32], strides = [1, 1]} : vector<8x48xf32> to vector<8x32xf32>
    %68 = vector.extract_strided_slice %64 {offsets = [0, 0], sizes = [8, 32], strides = [1, 1]} : vector<8x96xf32> to vector<8x32xf32>
    %69 = arith.addf %67, %68 : vector<8x32xf32>
    %70 = arith.negf %69 : vector<8x32xf32>
    %71 = math.exp %70 : vector<8x32xf32>
    %cst_18 = arith.constant 1.000000e+00 : f32
    %72 = vector.broadcast %cst_18 : f32 to vector<8x32xf32>
    %73 = arith.addf %72, %71 : vector<8x32xf32>
    %74 = arith.divf %72, %73 : vector<8x32xf32>
    %75 = vector.extract_strided_slice %66 {offsets = [0, 0], sizes = [8, 32], strides = [1, 1]} : vector<8x48xf32> to vector<8x32xf32>
    %76 = vector.extract_strided_slice %64 {offsets = [0, 48], sizes = [8, 32], strides = [1, 1]} : vector<8x96xf32> to vector<8x32xf32>
    %77 = arith.addf %75, %76 : vector<8x32xf32>
    %78 = arith.negf %77 : vector<8x32xf32>
    %79 = math.exp %78 : vector<8x32xf32>
    %cst_19 = arith.constant 1.000000e+00 : f32
    %80 = vector.broadcast %cst_19 : f32 to vector<8x32xf32>
    %81 = arith.addf %80, %79 : vector<8x32xf32>
    %82 = arith.divf %80, %81 : vector<8x32xf32>
    %83 = vector.extract_strided_slice %65 {offsets = [0, 32], sizes = [8, 16], strides = [1, 1]} : vector<8x48xf32> to vector<8x16xf32>
    %84 = vector.extract_strided_slice %74 {offsets = [0, 0], sizes = [8, 16], strides = [1, 1]} : vector<8x32xf32> to vector<8x16xf32>
    %85 = vector.extract_strided_slice %64 {offsets = [0, 32], sizes = [8, 16], strides = [1, 1]} : vector<8x96xf32> to vector<8x16xf32>
    %86 = vector.broadcast %8 : vector<1x16xf32> to vector<8x16xf32>
    %87 = arith.addf %85, %86 : vector<8x16xf32>
    %88 = arith.mulf %84, %87 : vector<8x16xf32>
    %89 = arith.addf %83, %88 : vector<8x16xf32>
    %90 = math.tanh %89 : vector<8x16xf32>
    %91 = vector.extract_strided_slice %66 {offsets = [0, 32], sizes = [8, 16], strides = [1, 1]} : vector<8x48xf32> to vector<8x16xf32>
    %92 = vector.extract_strided_slice %82 {offsets = [0, 0], sizes = [8, 16], strides = [1, 1]} : vector<8x32xf32> to vector<8x16xf32>
    %93 = vector.extract_strided_slice %64 {offsets = [0, 80], sizes = [8, 16], strides = [1, 1]} : vector<8x96xf32> to vector<8x16xf32>
    %94 = vector.broadcast %9 : vector<1x16xf32> to vector<8x16xf32>
    %95 = arith.addf %93, %94 : vector<8x16xf32>
    %96 = arith.mulf %92, %95 : vector<8x16xf32>
    %97 = arith.addf %91, %96 : vector<8x16xf32>
    %98 = math.tanh %97 : vector<8x16xf32>
    %99 = vector.extract_strided_slice %74 {offsets = [0, 16], sizes = [8, 16], strides = [1, 1]} : vector<8x32xf32> to vector<8x16xf32>
    %100 = vector.extract_strided_slice %63 {offsets = [0, 0], sizes = [8, 16], strides = [1, 1]} : vector<8x32xf32> to vector<8x16xf32>
    %101 = arith.subf %100, %90 : vector<8x16xf32>
    %102 = arith.mulf %99, %101 : vector<8x16xf32>
    %103 = arith.addf %90, %102 : vector<8x16xf32>
    %104 = vector.extract_strided_slice %82 {offsets = [0, 16], sizes = [8, 16], strides = [1, 1]} : vector<8x32xf32> to vector<8x16xf32>
    %105 = vector.extract_strided_slice %63 {offsets = [0, 16], sizes = [8, 16], strides = [1, 1]} : vector<8x32xf32> to vector<8x16xf32>
    %106 = arith.subf %105, %98 : vector<8x16xf32>
    %107 = arith.mulf %104, %106 : vector<8x16xf32>
    %108 = arith.addf %98, %107 : vector<8x16xf32>
    %109 = vector.extract_strided_slice %1 {offsets = [48, 0], sizes = [8, 1], strides = [1, 1]} : vector<64x1xf32> to vector<8x1xf32>
    %110 = vector.extract_strided_slice %63 {offsets = [0, 16], sizes = [8, 16], strides = [1, 1]} : vector<8x32xf32> to vector<8x16xf32>
    %111 = vector.extract_strided_slice %63 {offsets = [0, 16], sizes = [8, 16], strides = [1, 1]} : vector<8x32xf32> to vector<8x16xf32>
    %112 = arith.subf %108, %111 : vector<8x16xf32>
    %113 = vector.broadcast %109 : vector<8x1xf32> to vector<8x16xf32>
    %114 = arith.mulf %113, %112 : vector<8x16xf32>
    %115 = arith.addf %110, %114 : vector<8x16xf32>
    %116 = tpu.concatenate %103, %115 in 1 : vector<8x16xf32>, vector<8x16xf32> -> vector<8x32xf32>
    %cst_20 = arith.constant dense<0.000000e+00> : vector<8x96xf32>
    %117 = tpu.matmul %116, %7, %cst_20 {dimension_numbers = #tpu.dot_dimension_numbers<[1], [0], [0], [1], [0, 0, 1, 1], [], []>} : vector<8x32xf32>, vector<32x96xf32>, vector<8x96xf32> -> vector<8x96xf32>
    %118 = vector.extract_strided_slice %6 {offsets = [16, 0], sizes = [8, 48], strides = [1, 1]} : vector<64x96xf32> to vector<8x48xf32>
    %119 = vector.extract_strided_slice %6 {offsets = [40, 48], sizes = [8, 48], strides = [1, 1]} : vector<64x96xf32> to vector<8x48xf32>
    %120 = vector.extract_strided_slice %118 {offsets = [0, 0], sizes = [8, 32], strides = [1, 1]} : vector<8x48xf32> to vector<8x32xf32>
    %121 = vector.extract_strided_slice %117 {offsets = [0, 0], sizes = [8, 32], strides = [1, 1]} : vector<8x96xf32> to vector<8x32xf32>
    %122 = arith.addf %120, %121 : vector<8x32xf32>
    %123 = arith.negf %122 : vector<8x32xf32>
    %124 = math.exp %123 : vector<8x32xf32>
    %cst_21 = arith.constant 1.000000e+00 : f32
    %125 = vector.broadcast %cst_21 : f32 to vector<8x32xf32>
    %126 = arith.addf %125, %124 : vector<8x32xf32>
    %127 = arith.divf %125, %126 : vector<8x32xf32>
    %128 = vector.extract_strided_slice %119 {offsets = [0, 0], sizes = [8, 32], strides = [1, 1]} : vector<8x48xf32> to vector<8x32xf32>
    %129 = vector.extract_strided_slice %117 {offsets = [0, 48], sizes = [8, 32], strides = [1, 1]} : vector<8x96xf32> to vector<8x32xf32>
    %130 = arith.addf %128, %129 : vector<8x32xf32>
    %131 = arith.negf %130 : vector<8x32xf32>
    %132 = math.exp %131 : vector<8x32xf32>
    %cst_22 = arith.constant 1.000000e+00 : f32
    %133 = vector.broadcast %cst_22 : f32 to vector<8x32xf32>
    %134 = arith.addf %133, %132 : vector<8x32xf32>
    %135 = arith.divf %133, %134 : vector<8x32xf32>
    %136 = vector.extract_strided_slice %118 {offsets = [0, 32], sizes = [8, 16], strides = [1, 1]} : vector<8x48xf32> to vector<8x16xf32>
    %137 = vector.extract_strided_slice %127 {offsets = [0, 0], sizes = [8, 16], strides = [1, 1]} : vector<8x32xf32> to vector<8x16xf32>
    %138 = vector.extract_strided_slice %117 {offsets = [0, 32], sizes = [8, 16], strides = [1, 1]} : vector<8x96xf32> to vector<8x16xf32>
    %139 = vector.broadcast %8 : vector<1x16xf32> to vector<8x16xf32>
    %140 = arith.addf %138, %139 : vector<8x16xf32>
    %141 = arith.mulf %137, %140 : vector<8x16xf32>
    %142 = arith.addf %136, %141 : vector<8x16xf32>
    %143 = math.tanh %142 : vector<8x16xf32>
    %144 = vector.extract_strided_slice %119 {offsets = [0, 32], sizes = [8, 16], strides = [1, 1]} : vector<8x48xf32> to vector<8x16xf32>
    %145 = vector.extract_strided_slice %135 {offsets = [0, 0], sizes = [8, 16], strides = [1, 1]} : vector<8x32xf32> to vector<8x16xf32>
    %146 = vector.extract_strided_slice %117 {offsets = [0, 80], sizes = [8, 16], strides = [1, 1]} : vector<8x96xf32> to vector<8x16xf32>
    %147 = vector.broadcast %9 : vector<1x16xf32> to vector<8x16xf32>
    %148 = arith.addf %146, %147 : vector<8x16xf32>
    %149 = arith.mulf %145, %148 : vector<8x16xf32>
    %150 = arith.addf %144, %149 : vector<8x16xf32>
    %151 = math.tanh %150 : vector<8x16xf32>
    %152 = vector.extract_strided_slice %127 {offsets = [0, 16], sizes = [8, 16], strides = [1, 1]} : vector<8x32xf32> to vector<8x16xf32>
    %153 = vector.extract_strided_slice %116 {offsets = [0, 0], sizes = [8, 16], strides = [1, 1]} : vector<8x32xf32> to vector<8x16xf32>
    %154 = arith.subf %153, %143 : vector<8x16xf32>
    %155 = arith.mulf %152, %154 : vector<8x16xf32>
    %156 = arith.addf %143, %155 : vector<8x16xf32>
    %157 = vector.extract_strided_slice %135 {offsets = [0, 16], sizes = [8, 16], strides = [1, 1]} : vector<8x32xf32> to vector<8x16xf32>
    %158 = vector.extract_strided_slice %116 {offsets = [0, 16], sizes = [8, 16], strides = [1, 1]} : vector<8x32xf32> to vector<8x16xf32>
    %159 = arith.subf %158, %151 : vector<8x16xf32>
    %160 = arith.mulf %157, %159 : vector<8x16xf32>
    %161 = arith.addf %151, %160 : vector<8x16xf32>
    %162 = vector.extract_strided_slice %1 {offsets = [40, 0], sizes = [8, 1], strides = [1, 1]} : vector<64x1xf32> to vector<8x1xf32>
    %163 = vector.extract_strided_slice %116 {offsets = [0, 16], sizes = [8, 16], strides = [1, 1]} : vector<8x32xf32> to vector<8x16xf32>
    %164 = vector.extract_strided_slice %116 {offsets = [0, 16], sizes = [8, 16], strides = [1, 1]} : vector<8x32xf32> to vector<8x16xf32>
    %165 = arith.subf %161, %164 : vector<8x16xf32>
    %166 = vector.broadcast %162 : vector<8x1xf32> to vector<8x16xf32>
    %167 = arith.mulf %166, %165 : vector<8x16xf32>
    %168 = arith.addf %163, %167 : vector<8x16xf32>
    %169 = tpu.concatenate %156, %168 in 1 : vector<8x16xf32>, vector<8x16xf32> -> vector<8x32xf32>
    %cst_23 = arith.constant dense<0.000000e+00> : vector<8x96xf32>
    %170 = tpu.matmul %169, %7, %cst_23 {dimension_numbers = #tpu.dot_dimension_numbers<[1], [0], [0], [1], [0, 0, 1, 1], [], []>} : vector<8x32xf32>, vector<32x96xf32>, vector<8x96xf32> -> vector<8x96xf32>
    %171 = vector.extract_strided_slice %6 {offsets = [24, 0], sizes = [8, 48], strides = [1, 1]} : vector<64x96xf32> to vector<8x48xf32>
    %172 = vector.extract_strided_slice %6 {offsets = [32, 48], sizes = [8, 48], strides = [1, 1]} : vector<64x96xf32> to vector<8x48xf32>
    %173 = vector.extract_strided_slice %171 {offsets = [0, 0], sizes = [8, 32], strides = [1, 1]} : vector<8x48xf32> to vector<8x32xf32>
    %174 = vector.extract_strided_slice %170 {offsets = [0, 0], sizes = [8, 32], strides = [1, 1]} : vector<8x96xf32> to vector<8x32xf32>
    %175 = arith.addf %173, %174 : vector<8x32xf32>
    %176 = arith.negf %175 : vector<8x32xf32>
    %177 = math.exp %176 : vector<8x32xf32>
    %cst_24 = arith.constant 1.000000e+00 : f32
    %178 = vector.broadcast %cst_24 : f32 to vector<8x32xf32>
    %179 = arith.addf %178, %177 : vector<8x32xf32>
    %180 = arith.divf %178, %179 : vector<8x32xf32>
    %181 = vector.extract_strided_slice %172 {offsets = [0, 0], sizes = [8, 32], strides = [1, 1]} : vector<8x48xf32> to vector<8x32xf32>
    %182 = vector.extract_strided_slice %170 {offsets = [0, 48], sizes = [8, 32], strides = [1, 1]} : vector<8x96xf32> to vector<8x32xf32>
    %183 = arith.addf %181, %182 : vector<8x32xf32>
    %184 = arith.negf %183 : vector<8x32xf32>
    %185 = math.exp %184 : vector<8x32xf32>
    %cst_25 = arith.constant 1.000000e+00 : f32
    %186 = vector.broadcast %cst_25 : f32 to vector<8x32xf32>
    %187 = arith.addf %186, %185 : vector<8x32xf32>
    %188 = arith.divf %186, %187 : vector<8x32xf32>
    %189 = vector.extract_strided_slice %171 {offsets = [0, 32], sizes = [8, 16], strides = [1, 1]} : vector<8x48xf32> to vector<8x16xf32>
    %190 = vector.extract_strided_slice %180 {offsets = [0, 0], sizes = [8, 16], strides = [1, 1]} : vector<8x32xf32> to vector<8x16xf32>
    %191 = vector.extract_strided_slice %170 {offsets = [0, 32], sizes = [8, 16], strides = [1, 1]} : vector<8x96xf32> to vector<8x16xf32>
    %192 = vector.broadcast %8 : vector<1x16xf32> to vector<8x16xf32>
    %193 = arith.addf %191, %192 : vector<8x16xf32>
    %194 = arith.mulf %190, %193 : vector<8x16xf32>
    %195 = arith.addf %189, %194 : vector<8x16xf32>
    %196 = math.tanh %195 : vector<8x16xf32>
    %197 = vector.extract_strided_slice %172 {offsets = [0, 32], sizes = [8, 16], strides = [1, 1]} : vector<8x48xf32> to vector<8x16xf32>
    %198 = vector.extract_strided_slice %188 {offsets = [0, 0], sizes = [8, 16], strides = [1, 1]} : vector<8x32xf32> to vector<8x16xf32>
    %199 = vector.extract_strided_slice %170 {offsets = [0, 80], sizes = [8, 16], strides = [1, 1]} : vector<8x96xf32> to vector<8x16xf32>
    %200 = vector.broadcast %9 : vector<1x16xf32> to vector<8x16xf32>
    %201 = arith.addf %199, %200 : vector<8x16xf32>
    %202 = arith.mulf %198, %201 : vector<8x16xf32>
    %203 = arith.addf %197, %202 : vector<8x16xf32>
    %204 = math.tanh %203 : vector<8x16xf32>
    %205 = vector.extract_strided_slice %180 {offsets = [0, 16], sizes = [8, 16], strides = [1, 1]} : vector<8x32xf32> to vector<8x16xf32>
    %206 = vector.extract_strided_slice %169 {offsets = [0, 0], sizes = [8, 16], strides = [1, 1]} : vector<8x32xf32> to vector<8x16xf32>
    %207 = arith.subf %206, %196 : vector<8x16xf32>
    %208 = arith.mulf %205, %207 : vector<8x16xf32>
    %209 = arith.addf %196, %208 : vector<8x16xf32>
    %210 = vector.extract_strided_slice %188 {offsets = [0, 16], sizes = [8, 16], strides = [1, 1]} : vector<8x32xf32> to vector<8x16xf32>
    %211 = vector.extract_strided_slice %169 {offsets = [0, 16], sizes = [8, 16], strides = [1, 1]} : vector<8x32xf32> to vector<8x16xf32>
    %212 = arith.subf %211, %204 : vector<8x16xf32>
    %213 = arith.mulf %210, %212 : vector<8x16xf32>
    %214 = arith.addf %204, %213 : vector<8x16xf32>
    %215 = vector.extract_strided_slice %1 {offsets = [32, 0], sizes = [8, 1], strides = [1, 1]} : vector<64x1xf32> to vector<8x1xf32>
    %216 = vector.extract_strided_slice %169 {offsets = [0, 16], sizes = [8, 16], strides = [1, 1]} : vector<8x32xf32> to vector<8x16xf32>
    %217 = vector.extract_strided_slice %169 {offsets = [0, 16], sizes = [8, 16], strides = [1, 1]} : vector<8x32xf32> to vector<8x16xf32>
    %218 = arith.subf %214, %217 : vector<8x16xf32>
    %219 = vector.broadcast %215 : vector<8x1xf32> to vector<8x16xf32>
    %220 = arith.mulf %219, %218 : vector<8x16xf32>
    %221 = arith.addf %216, %220 : vector<8x16xf32>
    %222 = tpu.concatenate %209, %221 in 1 : vector<8x16xf32>, vector<8x16xf32> -> vector<8x32xf32>
    %cst_26 = arith.constant dense<0.000000e+00> : vector<8x96xf32>
    %223 = tpu.matmul %222, %7, %cst_26 {dimension_numbers = #tpu.dot_dimension_numbers<[1], [0], [0], [1], [0, 0, 1, 1], [], []>} : vector<8x32xf32>, vector<32x96xf32>, vector<8x96xf32> -> vector<8x96xf32>
    %224 = vector.extract_strided_slice %6 {offsets = [32, 0], sizes = [8, 48], strides = [1, 1]} : vector<64x96xf32> to vector<8x48xf32>
    %225 = vector.extract_strided_slice %6 {offsets = [24, 48], sizes = [8, 48], strides = [1, 1]} : vector<64x96xf32> to vector<8x48xf32>
    %226 = vector.extract_strided_slice %224 {offsets = [0, 0], sizes = [8, 32], strides = [1, 1]} : vector<8x48xf32> to vector<8x32xf32>
    %227 = vector.extract_strided_slice %223 {offsets = [0, 0], sizes = [8, 32], strides = [1, 1]} : vector<8x96xf32> to vector<8x32xf32>
    %228 = arith.addf %226, %227 : vector<8x32xf32>
    %229 = arith.negf %228 : vector<8x32xf32>
    %230 = math.exp %229 : vector<8x32xf32>
    %cst_27 = arith.constant 1.000000e+00 : f32
    %231 = vector.broadcast %cst_27 : f32 to vector<8x32xf32>
    %232 = arith.addf %231, %230 : vector<8x32xf32>
    %233 = arith.divf %231, %232 : vector<8x32xf32>
    %234 = vector.extract_strided_slice %225 {offsets = [0, 0], sizes = [8, 32], strides = [1, 1]} : vector<8x48xf32> to vector<8x32xf32>
    %235 = vector.extract_strided_slice %223 {offsets = [0, 48], sizes = [8, 32], strides = [1, 1]} : vector<8x96xf32> to vector<8x32xf32>
    %236 = arith.addf %234, %235 : vector<8x32xf32>
    %237 = arith.negf %236 : vector<8x32xf32>
    %238 = math.exp %237 : vector<8x32xf32>
    %cst_28 = arith.constant 1.000000e+00 : f32
    %239 = vector.broadcast %cst_28 : f32 to vector<8x32xf32>
    %240 = arith.addf %239, %238 : vector<8x32xf32>
    %241 = arith.divf %239, %240 : vector<8x32xf32>
    %242 = vector.extract_strided_slice %224 {offsets = [0, 32], sizes = [8, 16], strides = [1, 1]} : vector<8x48xf32> to vector<8x16xf32>
    %243 = vector.extract_strided_slice %233 {offsets = [0, 0], sizes = [8, 16], strides = [1, 1]} : vector<8x32xf32> to vector<8x16xf32>
    %244 = vector.extract_strided_slice %223 {offsets = [0, 32], sizes = [8, 16], strides = [1, 1]} : vector<8x96xf32> to vector<8x16xf32>
    %245 = vector.broadcast %8 : vector<1x16xf32> to vector<8x16xf32>
    %246 = arith.addf %244, %245 : vector<8x16xf32>
    %247 = arith.mulf %243, %246 : vector<8x16xf32>
    %248 = arith.addf %242, %247 : vector<8x16xf32>
    %249 = math.tanh %248 : vector<8x16xf32>
    %250 = vector.extract_strided_slice %225 {offsets = [0, 32], sizes = [8, 16], strides = [1, 1]} : vector<8x48xf32> to vector<8x16xf32>
    %251 = vector.extract_strided_slice %241 {offsets = [0, 0], sizes = [8, 16], strides = [1, 1]} : vector<8x32xf32> to vector<8x16xf32>
    %252 = vector.extract_strided_slice %223 {offsets = [0, 80], sizes = [8, 16], strides = [1, 1]} : vector<8x96xf32> to vector<8x16xf32>
    %253 = vector.broadcast %9 : vector<1x16xf32> to vector<8x16xf32>
    %254 = arith.addf %252, %253 : vector<8x16xf32>
    %255 = arith.mulf %251, %254 : vector<8x16xf32>
    %256 = arith.addf %250, %255 : vector<8x16xf32>
    %257 = math.tanh %256 : vector<8x16xf32>
    %258 = vector.extract_strided_slice %233 {offsets = [0, 16], sizes = [8, 16], strides = [1, 1]} : vector<8x32xf32> to vector<8x16xf32>
    %259 = vector.extract_strided_slice %222 {offsets = [0, 0], sizes = [8, 16], strides = [1, 1]} : vector<8x32xf32> to vector<8x16xf32>
    %260 = arith.subf %259, %249 : vector<8x16xf32>
    %261 = arith.mulf %258, %260 : vector<8x16xf32>
    %262 = arith.addf %249, %261 : vector<8x16xf32>
    %263 = vector.extract_strided_slice %241 {offsets = [0, 16], sizes = [8, 16], strides = [1, 1]} : vector<8x32xf32> to vector<8x16xf32>
    %264 = vector.extract_strided_slice %222 {offsets = [0, 16], sizes = [8, 16], strides = [1, 1]} : vector<8x32xf32> to vector<8x16xf32>
    %265 = arith.subf %264, %257 : vector<8x16xf32>
    %266 = arith.mulf %263, %265 : vector<8x16xf32>
    %267 = arith.addf %257, %266 : vector<8x16xf32>
    %268 = vector.extract_strided_slice %1 {offsets = [24, 0], sizes = [8, 1], strides = [1, 1]} : vector<64x1xf32> to vector<8x1xf32>
    %269 = vector.extract_strided_slice %222 {offsets = [0, 16], sizes = [8, 16], strides = [1, 1]} : vector<8x32xf32> to vector<8x16xf32>
    %270 = vector.extract_strided_slice %222 {offsets = [0, 16], sizes = [8, 16], strides = [1, 1]} : vector<8x32xf32> to vector<8x16xf32>
    %271 = arith.subf %267, %270 : vector<8x16xf32>
    %272 = vector.broadcast %268 : vector<8x1xf32> to vector<8x16xf32>
    %273 = arith.mulf %272, %271 : vector<8x16xf32>
    %274 = arith.addf %269, %273 : vector<8x16xf32>
    %275 = tpu.concatenate %262, %274 in 1 : vector<8x16xf32>, vector<8x16xf32> -> vector<8x32xf32>
    %cst_29 = arith.constant dense<0.000000e+00> : vector<8x96xf32>
    %276 = tpu.matmul %275, %7, %cst_29 {dimension_numbers = #tpu.dot_dimension_numbers<[1], [0], [0], [1], [0, 0, 1, 1], [], []>} : vector<8x32xf32>, vector<32x96xf32>, vector<8x96xf32> -> vector<8x96xf32>
    %277 = vector.extract_strided_slice %6 {offsets = [40, 0], sizes = [8, 48], strides = [1, 1]} : vector<64x96xf32> to vector<8x48xf32>
    %278 = vector.extract_strided_slice %6 {offsets = [16, 48], sizes = [8, 48], strides = [1, 1]} : vector<64x96xf32> to vector<8x48xf32>
    %279 = vector.extract_strided_slice %277 {offsets = [0, 0], sizes = [8, 32], strides = [1, 1]} : vector<8x48xf32> to vector<8x32xf32>
    %280 = vector.extract_strided_slice %276 {offsets = [0, 0], sizes = [8, 32], strides = [1, 1]} : vector<8x96xf32> to vector<8x32xf32>
    %281 = arith.addf %279, %280 : vector<8x32xf32>
    %282 = arith.negf %281 : vector<8x32xf32>
    %283 = math.exp %282 : vector<8x32xf32>
    %cst_30 = arith.constant 1.000000e+00 : f32
    %284 = vector.broadcast %cst_30 : f32 to vector<8x32xf32>
    %285 = arith.addf %284, %283 : vector<8x32xf32>
    %286 = arith.divf %284, %285 : vector<8x32xf32>
    %287 = vector.extract_strided_slice %278 {offsets = [0, 0], sizes = [8, 32], strides = [1, 1]} : vector<8x48xf32> to vector<8x32xf32>
    %288 = vector.extract_strided_slice %276 {offsets = [0, 48], sizes = [8, 32], strides = [1, 1]} : vector<8x96xf32> to vector<8x32xf32>
    %289 = arith.addf %287, %288 : vector<8x32xf32>
    %290 = arith.negf %289 : vector<8x32xf32>
    %291 = math.exp %290 : vector<8x32xf32>
    %cst_31 = arith.constant 1.000000e+00 : f32
    %292 = vector.broadcast %cst_31 : f32 to vector<8x32xf32>
    %293 = arith.addf %292, %291 : vector<8x32xf32>
    %294 = arith.divf %292, %293 : vector<8x32xf32>
    %295 = vector.extract_strided_slice %277 {offsets = [0, 32], sizes = [8, 16], strides = [1, 1]} : vector<8x48xf32> to vector<8x16xf32>
    %296 = vector.extract_strided_slice %286 {offsets = [0, 0], sizes = [8, 16], strides = [1, 1]} : vector<8x32xf32> to vector<8x16xf32>
    %297 = vector.extract_strided_slice %276 {offsets = [0, 32], sizes = [8, 16], strides = [1, 1]} : vector<8x96xf32> to vector<8x16xf32>
    %298 = vector.broadcast %8 : vector<1x16xf32> to vector<8x16xf32>
    %299 = arith.addf %297, %298 : vector<8x16xf32>
    %300 = arith.mulf %296, %299 : vector<8x16xf32>
    %301 = arith.addf %295, %300 : vector<8x16xf32>
    %302 = math.tanh %301 : vector<8x16xf32>
    %303 = vector.extract_strided_slice %278 {offsets = [0, 32], sizes = [8, 16], strides = [1, 1]} : vector<8x48xf32> to vector<8x16xf32>
    %304 = vector.extract_strided_slice %294 {offsets = [0, 0], sizes = [8, 16], strides = [1, 1]} : vector<8x32xf32> to vector<8x16xf32>
    %305 = vector.extract_strided_slice %276 {offsets = [0, 80], sizes = [8, 16], strides = [1, 1]} : vector<8x96xf32> to vector<8x16xf32>
    %306 = vector.broadcast %9 : vector<1x16xf32> to vector<8x16xf32>
    %307 = arith.addf %305, %306 : vector<8x16xf32>
    %308 = arith.mulf %304, %307 : vector<8x16xf32>
    %309 = arith.addf %303, %308 : vector<8x16xf32>
    %310 = math.tanh %309 : vector<8x16xf32>
    %311 = vector.extract_strided_slice %286 {offsets = [0, 16], sizes = [8, 16], strides = [1, 1]} : vector<8x32xf32> to vector<8x16xf32>
    %312 = vector.extract_strided_slice %275 {offsets = [0, 0], sizes = [8, 16], strides = [1, 1]} : vector<8x32xf32> to vector<8x16xf32>
    %313 = arith.subf %312, %302 : vector<8x16xf32>
    %314 = arith.mulf %311, %313 : vector<8x16xf32>
    %315 = arith.addf %302, %314 : vector<8x16xf32>
    %316 = vector.extract_strided_slice %294 {offsets = [0, 16], sizes = [8, 16], strides = [1, 1]} : vector<8x32xf32> to vector<8x16xf32>
    %317 = vector.extract_strided_slice %275 {offsets = [0, 16], sizes = [8, 16], strides = [1, 1]} : vector<8x32xf32> to vector<8x16xf32>
    %318 = arith.subf %317, %310 : vector<8x16xf32>
    %319 = arith.mulf %316, %318 : vector<8x16xf32>
    %320 = arith.addf %310, %319 : vector<8x16xf32>
    %321 = vector.extract_strided_slice %1 {offsets = [16, 0], sizes = [8, 1], strides = [1, 1]} : vector<64x1xf32> to vector<8x1xf32>
    %322 = vector.extract_strided_slice %275 {offsets = [0, 16], sizes = [8, 16], strides = [1, 1]} : vector<8x32xf32> to vector<8x16xf32>
    %323 = vector.extract_strided_slice %275 {offsets = [0, 16], sizes = [8, 16], strides = [1, 1]} : vector<8x32xf32> to vector<8x16xf32>
    %324 = arith.subf %320, %323 : vector<8x16xf32>
    %325 = vector.broadcast %321 : vector<8x1xf32> to vector<8x16xf32>
    %326 = arith.mulf %325, %324 : vector<8x16xf32>
    %327 = arith.addf %322, %326 : vector<8x16xf32>
    %328 = tpu.concatenate %315, %327 in 1 : vector<8x16xf32>, vector<8x16xf32> -> vector<8x32xf32>
    %cst_32 = arith.constant dense<0.000000e+00> : vector<8x96xf32>
    %329 = tpu.matmul %328, %7, %cst_32 {dimension_numbers = #tpu.dot_dimension_numbers<[1], [0], [0], [1], [0, 0, 1, 1], [], []>} : vector<8x32xf32>, vector<32x96xf32>, vector<8x96xf32> -> vector<8x96xf32>
    %330 = vector.extract_strided_slice %6 {offsets = [48, 0], sizes = [8, 48], strides = [1, 1]} : vector<64x96xf32> to vector<8x48xf32>
    %331 = vector.extract_strided_slice %6 {offsets = [8, 48], sizes = [8, 48], strides = [1, 1]} : vector<64x96xf32> to vector<8x48xf32>
    %332 = vector.extract_strided_slice %330 {offsets = [0, 0], sizes = [8, 32], strides = [1, 1]} : vector<8x48xf32> to vector<8x32xf32>
    %333 = vector.extract_strided_slice %329 {offsets = [0, 0], sizes = [8, 32], strides = [1, 1]} : vector<8x96xf32> to vector<8x32xf32>
    %334 = arith.addf %332, %333 : vector<8x32xf32>
    %335 = arith.negf %334 : vector<8x32xf32>
    %336 = math.exp %335 : vector<8x32xf32>
    %cst_33 = arith.constant 1.000000e+00 : f32
    %337 = vector.broadcast %cst_33 : f32 to vector<8x32xf32>
    %338 = arith.addf %337, %336 : vector<8x32xf32>
    %339 = arith.divf %337, %338 : vector<8x32xf32>
    %340 = vector.extract_strided_slice %331 {offsets = [0, 0], sizes = [8, 32], strides = [1, 1]} : vector<8x48xf32> to vector<8x32xf32>
    %341 = vector.extract_strided_slice %329 {offsets = [0, 48], sizes = [8, 32], strides = [1, 1]} : vector<8x96xf32> to vector<8x32xf32>
    %342 = arith.addf %340, %341 : vector<8x32xf32>
    %343 = arith.negf %342 : vector<8x32xf32>
    %344 = math.exp %343 : vector<8x32xf32>
    %cst_34 = arith.constant 1.000000e+00 : f32
    %345 = vector.broadcast %cst_34 : f32 to vector<8x32xf32>
    %346 = arith.addf %345, %344 : vector<8x32xf32>
    %347 = arith.divf %345, %346 : vector<8x32xf32>
    %348 = vector.extract_strided_slice %330 {offsets = [0, 32], sizes = [8, 16], strides = [1, 1]} : vector<8x48xf32> to vector<8x16xf32>
    %349 = vector.extract_strided_slice %339 {offsets = [0, 0], sizes = [8, 16], strides = [1, 1]} : vector<8x32xf32> to vector<8x16xf32>
    %350 = vector.extract_strided_slice %329 {offsets = [0, 32], sizes = [8, 16], strides = [1, 1]} : vector<8x96xf32> to vector<8x16xf32>
    %351 = vector.broadcast %8 : vector<1x16xf32> to vector<8x16xf32>
    %352 = arith.addf %350, %351 : vector<8x16xf32>
    %353 = arith.mulf %349, %352 : vector<8x16xf32>
    %354 = arith.addf %348, %353 : vector<8x16xf32>
    %355 = math.tanh %354 : vector<8x16xf32>
    %356 = vector.extract_strided_slice %331 {offsets = [0, 32], sizes = [8, 16], strides = [1, 1]} : vector<8x48xf32> to vector<8x16xf32>
    %357 = vector.extract_strided_slice %347 {offsets = [0, 0], sizes = [8, 16], strides = [1, 1]} : vector<8x32xf32> to vector<8x16xf32>
    %358 = vector.extract_strided_slice %329 {offsets = [0, 80], sizes = [8, 16], strides = [1, 1]} : vector<8x96xf32> to vector<8x16xf32>
    %359 = vector.broadcast %9 : vector<1x16xf32> to vector<8x16xf32>
    %360 = arith.addf %358, %359 : vector<8x16xf32>
    %361 = arith.mulf %357, %360 : vector<8x16xf32>
    %362 = arith.addf %356, %361 : vector<8x16xf32>
    %363 = math.tanh %362 : vector<8x16xf32>
    %364 = vector.extract_strided_slice %339 {offsets = [0, 16], sizes = [8, 16], strides = [1, 1]} : vector<8x32xf32> to vector<8x16xf32>
    %365 = vector.extract_strided_slice %328 {offsets = [0, 0], sizes = [8, 16], strides = [1, 1]} : vector<8x32xf32> to vector<8x16xf32>
    %366 = arith.subf %365, %355 : vector<8x16xf32>
    %367 = arith.mulf %364, %366 : vector<8x16xf32>
    %368 = arith.addf %355, %367 : vector<8x16xf32>
    %369 = vector.extract_strided_slice %347 {offsets = [0, 16], sizes = [8, 16], strides = [1, 1]} : vector<8x32xf32> to vector<8x16xf32>
    %370 = vector.extract_strided_slice %328 {offsets = [0, 16], sizes = [8, 16], strides = [1, 1]} : vector<8x32xf32> to vector<8x16xf32>
    %371 = arith.subf %370, %363 : vector<8x16xf32>
    %372 = arith.mulf %369, %371 : vector<8x16xf32>
    %373 = arith.addf %363, %372 : vector<8x16xf32>
    %374 = vector.extract_strided_slice %1 {offsets = [8, 0], sizes = [8, 1], strides = [1, 1]} : vector<64x1xf32> to vector<8x1xf32>
    %375 = vector.extract_strided_slice %328 {offsets = [0, 16], sizes = [8, 16], strides = [1, 1]} : vector<8x32xf32> to vector<8x16xf32>
    %376 = vector.extract_strided_slice %328 {offsets = [0, 16], sizes = [8, 16], strides = [1, 1]} : vector<8x32xf32> to vector<8x16xf32>
    %377 = arith.subf %373, %376 : vector<8x16xf32>
    %378 = vector.broadcast %374 : vector<8x1xf32> to vector<8x16xf32>
    %379 = arith.mulf %378, %377 : vector<8x16xf32>
    %380 = arith.addf %375, %379 : vector<8x16xf32>
    %381 = tpu.concatenate %368, %380 in 1 : vector<8x16xf32>, vector<8x16xf32> -> vector<8x32xf32>
    %cst_35 = arith.constant dense<0.000000e+00> : vector<8x96xf32>
    %382 = tpu.matmul %381, %7, %cst_35 {dimension_numbers = #tpu.dot_dimension_numbers<[1], [0], [0], [1], [0, 0, 1, 1], [], []>} : vector<8x32xf32>, vector<32x96xf32>, vector<8x96xf32> -> vector<8x96xf32>
    %383 = vector.extract_strided_slice %6 {offsets = [56, 0], sizes = [8, 48], strides = [1, 1]} : vector<64x96xf32> to vector<8x48xf32>
    %384 = vector.extract_strided_slice %6 {offsets = [0, 48], sizes = [8, 48], strides = [1, 1]} : vector<64x96xf32> to vector<8x48xf32>
    %385 = vector.extract_strided_slice %383 {offsets = [0, 0], sizes = [8, 32], strides = [1, 1]} : vector<8x48xf32> to vector<8x32xf32>
    %386 = vector.extract_strided_slice %382 {offsets = [0, 0], sizes = [8, 32], strides = [1, 1]} : vector<8x96xf32> to vector<8x32xf32>
    %387 = arith.addf %385, %386 : vector<8x32xf32>
    %388 = arith.negf %387 : vector<8x32xf32>
    %389 = math.exp %388 : vector<8x32xf32>
    %cst_36 = arith.constant 1.000000e+00 : f32
    %390 = vector.broadcast %cst_36 : f32 to vector<8x32xf32>
    %391 = arith.addf %390, %389 : vector<8x32xf32>
    %392 = arith.divf %390, %391 : vector<8x32xf32>
    %393 = vector.extract_strided_slice %384 {offsets = [0, 0], sizes = [8, 32], strides = [1, 1]} : vector<8x48xf32> to vector<8x32xf32>
    %394 = vector.extract_strided_slice %382 {offsets = [0, 48], sizes = [8, 32], strides = [1, 1]} : vector<8x96xf32> to vector<8x32xf32>
    %395 = arith.addf %393, %394 : vector<8x32xf32>
    %396 = arith.negf %395 : vector<8x32xf32>
    %397 = math.exp %396 : vector<8x32xf32>
    %cst_37 = arith.constant 1.000000e+00 : f32
    %398 = vector.broadcast %cst_37 : f32 to vector<8x32xf32>
    %399 = arith.addf %398, %397 : vector<8x32xf32>
    %400 = arith.divf %398, %399 : vector<8x32xf32>
    %401 = vector.extract_strided_slice %383 {offsets = [0, 32], sizes = [8, 16], strides = [1, 1]} : vector<8x48xf32> to vector<8x16xf32>
    %402 = vector.extract_strided_slice %392 {offsets = [0, 0], sizes = [8, 16], strides = [1, 1]} : vector<8x32xf32> to vector<8x16xf32>
    %403 = vector.extract_strided_slice %382 {offsets = [0, 32], sizes = [8, 16], strides = [1, 1]} : vector<8x96xf32> to vector<8x16xf32>
    %404 = vector.broadcast %8 : vector<1x16xf32> to vector<8x16xf32>
    %405 = arith.addf %403, %404 : vector<8x16xf32>
    %406 = arith.mulf %402, %405 : vector<8x16xf32>
    %407 = arith.addf %401, %406 : vector<8x16xf32>
    %408 = math.tanh %407 : vector<8x16xf32>
    %409 = vector.extract_strided_slice %384 {offsets = [0, 32], sizes = [8, 16], strides = [1, 1]} : vector<8x48xf32> to vector<8x16xf32>
    %410 = vector.extract_strided_slice %400 {offsets = [0, 0], sizes = [8, 16], strides = [1, 1]} : vector<8x32xf32> to vector<8x16xf32>
    %411 = vector.extract_strided_slice %382 {offsets = [0, 80], sizes = [8, 16], strides = [1, 1]} : vector<8x96xf32> to vector<8x16xf32>
    %412 = vector.broadcast %9 : vector<1x16xf32> to vector<8x16xf32>
    %413 = arith.addf %411, %412 : vector<8x16xf32>
    %414 = arith.mulf %410, %413 : vector<8x16xf32>
    %415 = arith.addf %409, %414 : vector<8x16xf32>
    %416 = math.tanh %415 : vector<8x16xf32>
    %417 = vector.extract_strided_slice %392 {offsets = [0, 16], sizes = [8, 16], strides = [1, 1]} : vector<8x32xf32> to vector<8x16xf32>
    %418 = vector.extract_strided_slice %381 {offsets = [0, 0], sizes = [8, 16], strides = [1, 1]} : vector<8x32xf32> to vector<8x16xf32>
    %419 = arith.subf %418, %408 : vector<8x16xf32>
    %420 = arith.mulf %417, %419 : vector<8x16xf32>
    %421 = arith.addf %408, %420 : vector<8x16xf32>
    %422 = vector.extract_strided_slice %400 {offsets = [0, 16], sizes = [8, 16], strides = [1, 1]} : vector<8x32xf32> to vector<8x16xf32>
    %423 = vector.extract_strided_slice %381 {offsets = [0, 16], sizes = [8, 16], strides = [1, 1]} : vector<8x32xf32> to vector<8x16xf32>
    %424 = arith.subf %423, %416 : vector<8x16xf32>
    %425 = arith.mulf %422, %424 : vector<8x16xf32>
    %426 = arith.addf %416, %425 : vector<8x16xf32>
    %427 = vector.extract_strided_slice %1 {offsets = [0, 0], sizes = [8, 1], strides = [1, 1]} : vector<64x1xf32> to vector<8x1xf32>
    %428 = vector.extract_strided_slice %381 {offsets = [0, 16], sizes = [8, 16], strides = [1, 1]} : vector<8x32xf32> to vector<8x16xf32>
    %429 = vector.extract_strided_slice %381 {offsets = [0, 16], sizes = [8, 16], strides = [1, 1]} : vector<8x32xf32> to vector<8x16xf32>
    %430 = arith.subf %426, %429 : vector<8x16xf32>
    %431 = vector.broadcast %427 : vector<8x1xf32> to vector<8x16xf32>
    %432 = arith.mulf %431, %430 : vector<8x16xf32>
    %433 = arith.addf %428, %432 : vector<8x16xf32>
    %434 = tpu.concatenate %50, %433 in 1 : vector<8x16xf32>, vector<8x16xf32> -> vector<8x32xf32>
    %435 = tpu.concatenate %103, %380 in 1 : vector<8x16xf32>, vector<8x16xf32> -> vector<8x32xf32>
    %436 = tpu.concatenate %156, %327 in 1 : vector<8x16xf32>, vector<8x16xf32> -> vector<8x32xf32>
    %437 = tpu.concatenate %209, %274 in 1 : vector<8x16xf32>, vector<8x16xf32> -> vector<8x32xf32>
    %438 = tpu.concatenate %262, %221 in 1 : vector<8x16xf32>, vector<8x16xf32> -> vector<8x32xf32>
    %439 = tpu.concatenate %315, %168 in 1 : vector<8x16xf32>, vector<8x16xf32> -> vector<8x32xf32>
    %440 = tpu.concatenate %368, %115 in 1 : vector<8x16xf32>, vector<8x16xf32> -> vector<8x32xf32>
    %441 = tpu.concatenate %421, %62 in 1 : vector<8x16xf32>, vector<8x16xf32> -> vector<8x32xf32>
    %442 = tpu.concatenate %434, %435, %436, %437, %438, %439, %440, %441 in 0 : vector<8x32xf32>, vector<8x32xf32>, vector<8x32xf32>, vector<8x32xf32>, vector<8x32xf32>, vector<8x32xf32>, vector<8x32xf32>, vector<8x32xf32> -> vector<64x32xf32>
    %c0_38 = arith.constant 0 : index
    %c0_39 = arith.constant 0 : index
    %443 = vector.load %arg7[%c0_38, %c0_39] : memref<32x32xf32, #tpu.memory_space<vmem>>, vector<32x32xf32>
    %cst_40 = arith.constant dense<0.000000e+00> : vector<64x32xf32>
    %444 = tpu.matmul %442, %443, %cst_40 {dimension_numbers = #tpu.dot_dimension_numbers<[1], [0], [0], [1], [0, 0, 1, 1], [], []>} : vector<64x32xf32>, vector<32x32xf32>, vector<64x32xf32> -> vector<64x32xf32>
    %c0_41 = arith.constant 0 : index
    %c0_42 = arith.constant 0 : index
    %445 = vector.load %arg8[%c0_41, %c0_42] : memref<1x32xf32, #tpu.memory_space<vmem>>, vector<1x32xf32>
    %446 = vector.broadcast %445 : vector<1x32xf32> to vector<64x32xf32>
    %447 = arith.addf %444, %446 : vector<64x32xf32>
    %448 = math.tanh %447 : vector<64x32xf32>
    %c0_43 = arith.constant 0 : index
    %c0_44 = arith.constant 0 : index
    %449 = vector.load %arg9[%c0_43, %c0_44] : memref<1x32xf32, #tpu.memory_space<vmem>>, vector<1x32xf32>
    %450 = vector.broadcast %449 : vector<1x32xf32> to vector<64x32xf32>
    %451 = arith.mulf %448, %450 : vector<64x32xf32>
    %cst_45 = arith.constant dense<0.000000e+00> : vector<64xf32>
    %452 = vector.multi_reduction <add>, %451, %cst_45 [1] : vector<64x32xf32> to vector<64xf32>
    %453 = vector.shape_cast %452 : vector<64xf32> to vector<64x1xf32>
    %cst_46 = arith.constant 0.000000e+00 : f32
    %454 = vector.broadcast %cst_46 : f32 to vector<8x1xf32>
    %455 = vector.extract_strided_slice %453 {offsets = [0, 0], sizes = [8, 1], strides = [1, 1]} : vector<64x1xf32> to vector<8x1xf32>
    %456 = vector.extract_strided_slice %1 {offsets = [0, 0], sizes = [8, 1], strides = [1, 1]} : vector<64x1xf32> to vector<8x1xf32>
    %cst_47 = arith.constant 5.000000e-01 : f32
    %457 = vector.broadcast %cst_47 : f32 to vector<8x1xf32>
    %458 = arith.cmpf ogt, %456, %457 : vector<8x1xf32>
    %cst_48 = arith.constant -1.000000e+30 : f32
    %459 = vector.broadcast %cst_48 : f32 to vector<8x1xf32>
    %460 = arith.select %458, %455, %459 : vector<8x1xi1>, vector<8x1xf32>
    %461 = arith.maximumf %454, %460 : vector<8x1xf32>
    %462 = vector.extract_strided_slice %453 {offsets = [8, 0], sizes = [8, 1], strides = [1, 1]} : vector<64x1xf32> to vector<8x1xf32>
    %463 = vector.extract_strided_slice %1 {offsets = [8, 0], sizes = [8, 1], strides = [1, 1]} : vector<64x1xf32> to vector<8x1xf32>
    %cst_49 = arith.constant 5.000000e-01 : f32
    %464 = vector.broadcast %cst_49 : f32 to vector<8x1xf32>
    %465 = arith.cmpf ogt, %463, %464 : vector<8x1xf32>
    %cst_50 = arith.constant -1.000000e+30 : f32
    %466 = vector.broadcast %cst_50 : f32 to vector<8x1xf32>
    %467 = arith.select %465, %462, %466 : vector<8x1xi1>, vector<8x1xf32>
    %468 = arith.maximumf %461, %467 : vector<8x1xf32>
    %469 = vector.extract_strided_slice %453 {offsets = [16, 0], sizes = [8, 1], strides = [1, 1]} : vector<64x1xf32> to vector<8x1xf32>
    %470 = vector.extract_strided_slice %1 {offsets = [16, 0], sizes = [8, 1], strides = [1, 1]} : vector<64x1xf32> to vector<8x1xf32>
    %cst_51 = arith.constant 5.000000e-01 : f32
    %471 = vector.broadcast %cst_51 : f32 to vector<8x1xf32>
    %472 = arith.cmpf ogt, %470, %471 : vector<8x1xf32>
    %cst_52 = arith.constant -1.000000e+30 : f32
    %473 = vector.broadcast %cst_52 : f32 to vector<8x1xf32>
    %474 = arith.select %472, %469, %473 : vector<8x1xi1>, vector<8x1xf32>
    %475 = arith.maximumf %468, %474 : vector<8x1xf32>
    %476 = vector.extract_strided_slice %453 {offsets = [24, 0], sizes = [8, 1], strides = [1, 1]} : vector<64x1xf32> to vector<8x1xf32>
    %477 = vector.extract_strided_slice %1 {offsets = [24, 0], sizes = [8, 1], strides = [1, 1]} : vector<64x1xf32> to vector<8x1xf32>
    %cst_53 = arith.constant 5.000000e-01 : f32
    %478 = vector.broadcast %cst_53 : f32 to vector<8x1xf32>
    %479 = arith.cmpf ogt, %477, %478 : vector<8x1xf32>
    %cst_54 = arith.constant -1.000000e+30 : f32
    %480 = vector.broadcast %cst_54 : f32 to vector<8x1xf32>
    %481 = arith.select %479, %476, %480 : vector<8x1xi1>, vector<8x1xf32>
    %482 = arith.maximumf %475, %481 : vector<8x1xf32>
    %483 = vector.extract_strided_slice %453 {offsets = [32, 0], sizes = [8, 1], strides = [1, 1]} : vector<64x1xf32> to vector<8x1xf32>
    %484 = vector.extract_strided_slice %1 {offsets = [32, 0], sizes = [8, 1], strides = [1, 1]} : vector<64x1xf32> to vector<8x1xf32>
    %cst_55 = arith.constant 5.000000e-01 : f32
    %485 = vector.broadcast %cst_55 : f32 to vector<8x1xf32>
    %486 = arith.cmpf ogt, %484, %485 : vector<8x1xf32>
    %cst_56 = arith.constant -1.000000e+30 : f32
    %487 = vector.broadcast %cst_56 : f32 to vector<8x1xf32>
    %488 = arith.select %486, %483, %487 : vector<8x1xi1>, vector<8x1xf32>
    %489 = arith.maximumf %482, %488 : vector<8x1xf32>
    %490 = vector.extract_strided_slice %453 {offsets = [40, 0], sizes = [8, 1], strides = [1, 1]} : vector<64x1xf32> to vector<8x1xf32>
    %491 = vector.extract_strided_slice %1 {offsets = [40, 0], sizes = [8, 1], strides = [1, 1]} : vector<64x1xf32> to vector<8x1xf32>
    %cst_57 = arith.constant 5.000000e-01 : f32
    %492 = vector.broadcast %cst_57 : f32 to vector<8x1xf32>
    %493 = arith.cmpf ogt, %491, %492 : vector<8x1xf32>
    %cst_58 = arith.constant -1.000000e+30 : f32
    %494 = vector.broadcast %cst_58 : f32 to vector<8x1xf32>
    %495 = arith.select %493, %490, %494 : vector<8x1xi1>, vector<8x1xf32>
    %496 = arith.maximumf %489, %495 : vector<8x1xf32>
    %497 = vector.extract_strided_slice %453 {offsets = [48, 0], sizes = [8, 1], strides = [1, 1]} : vector<64x1xf32> to vector<8x1xf32>
    %498 = vector.extract_strided_slice %1 {offsets = [48, 0], sizes = [8, 1], strides = [1, 1]} : vector<64x1xf32> to vector<8x1xf32>
    %cst_59 = arith.constant 5.000000e-01 : f32
    %499 = vector.broadcast %cst_59 : f32 to vector<8x1xf32>
    %500 = arith.cmpf ogt, %498, %499 : vector<8x1xf32>
    %cst_60 = arith.constant -1.000000e+30 : f32
    %501 = vector.broadcast %cst_60 : f32 to vector<8x1xf32>
    %502 = arith.select %500, %497, %501 : vector<8x1xi1>, vector<8x1xf32>
    %503 = arith.maximumf %496, %502 : vector<8x1xf32>
    %504 = vector.extract_strided_slice %453 {offsets = [56, 0], sizes = [8, 1], strides = [1, 1]} : vector<64x1xf32> to vector<8x1xf32>
    %505 = vector.extract_strided_slice %1 {offsets = [56, 0], sizes = [8, 1], strides = [1, 1]} : vector<64x1xf32> to vector<8x1xf32>
    %cst_61 = arith.constant 5.000000e-01 : f32
    %506 = vector.broadcast %cst_61 : f32 to vector<8x1xf32>
    %507 = arith.cmpf ogt, %505, %506 : vector<8x1xf32>
    %cst_62 = arith.constant -1.000000e+30 : f32
    %508 = vector.broadcast %cst_62 : f32 to vector<8x1xf32>
    %509 = arith.select %507, %504, %508 : vector<8x1xi1>, vector<8x1xf32>
    %510 = arith.maximumf %503, %509 : vector<8x1xf32>
    %cst_63 = arith.constant 0.000000e+00 : f32
    %511 = vector.broadcast %cst_63 : f32 to vector<8x32xf32>
    %cst_64 = arith.constant 0.000000e+00 : f32
    %512 = vector.broadcast %cst_64 : f32 to vector<8x1xf32>
    %513 = vector.extract_strided_slice %453 {offsets = [0, 0], sizes = [8, 1], strides = [1, 1]} : vector<64x1xf32> to vector<8x1xf32>
    %514 = vector.extract_strided_slice %1 {offsets = [0, 0], sizes = [8, 1], strides = [1, 1]} : vector<64x1xf32> to vector<8x1xf32>
    %515 = arith.subf %513, %510 : vector<8x1xf32>
    %516 = math.exp %515 : vector<8x1xf32>
    %517 = arith.mulf %516, %514 : vector<8x1xf32>
    %518 = vector.extract_strided_slice %442 {offsets = [0, 0], sizes = [8, 32], strides = [1, 1]} : vector<64x32xf32> to vector<8x32xf32>
    %519 = vector.broadcast %517 : vector<8x1xf32> to vector<8x32xf32>
    %520 = arith.mulf %519, %518 : vector<8x32xf32>
    %521 = arith.addf %511, %520 : vector<8x32xf32>
    %522 = arith.addf %512, %517 : vector<8x1xf32>
    %523 = vector.extract_strided_slice %453 {offsets = [8, 0], sizes = [8, 1], strides = [1, 1]} : vector<64x1xf32> to vector<8x1xf32>
    %524 = vector.extract_strided_slice %1 {offsets = [8, 0], sizes = [8, 1], strides = [1, 1]} : vector<64x1xf32> to vector<8x1xf32>
    %525 = arith.subf %523, %510 : vector<8x1xf32>
    %526 = math.exp %525 : vector<8x1xf32>
    %527 = arith.mulf %526, %524 : vector<8x1xf32>
    %528 = vector.extract_strided_slice %442 {offsets = [8, 0], sizes = [8, 32], strides = [1, 1]} : vector<64x32xf32> to vector<8x32xf32>
    %529 = vector.broadcast %527 : vector<8x1xf32> to vector<8x32xf32>
    %530 = arith.mulf %529, %528 : vector<8x32xf32>
    %531 = arith.addf %521, %530 : vector<8x32xf32>
    %532 = arith.addf %522, %527 : vector<8x1xf32>
    %533 = vector.extract_strided_slice %453 {offsets = [16, 0], sizes = [8, 1], strides = [1, 1]} : vector<64x1xf32> to vector<8x1xf32>
    %534 = vector.extract_strided_slice %1 {offsets = [16, 0], sizes = [8, 1], strides = [1, 1]} : vector<64x1xf32> to vector<8x1xf32>
    %535 = arith.subf %533, %510 : vector<8x1xf32>
    %536 = math.exp %535 : vector<8x1xf32>
    %537 = arith.mulf %536, %534 : vector<8x1xf32>
    %538 = vector.extract_strided_slice %442 {offsets = [16, 0], sizes = [8, 32], strides = [1, 1]} : vector<64x32xf32> to vector<8x32xf32>
    %539 = vector.broadcast %537 : vector<8x1xf32> to vector<8x32xf32>
    %540 = arith.mulf %539, %538 : vector<8x32xf32>
    %541 = arith.addf %531, %540 : vector<8x32xf32>
    %542 = arith.addf %532, %537 : vector<8x1xf32>
    %543 = vector.extract_strided_slice %453 {offsets = [24, 0], sizes = [8, 1], strides = [1, 1]} : vector<64x1xf32> to vector<8x1xf32>
    %544 = vector.extract_strided_slice %1 {offsets = [24, 0], sizes = [8, 1], strides = [1, 1]} : vector<64x1xf32> to vector<8x1xf32>
    %545 = arith.subf %543, %510 : vector<8x1xf32>
    %546 = math.exp %545 : vector<8x1xf32>
    %547 = arith.mulf %546, %544 : vector<8x1xf32>
    %548 = vector.extract_strided_slice %442 {offsets = [24, 0], sizes = [8, 32], strides = [1, 1]} : vector<64x32xf32> to vector<8x32xf32>
    %549 = vector.broadcast %547 : vector<8x1xf32> to vector<8x32xf32>
    %550 = arith.mulf %549, %548 : vector<8x32xf32>
    %551 = arith.addf %541, %550 : vector<8x32xf32>
    %552 = arith.addf %542, %547 : vector<8x1xf32>
    %553 = vector.extract_strided_slice %453 {offsets = [32, 0], sizes = [8, 1], strides = [1, 1]} : vector<64x1xf32> to vector<8x1xf32>
    %554 = vector.extract_strided_slice %1 {offsets = [32, 0], sizes = [8, 1], strides = [1, 1]} : vector<64x1xf32> to vector<8x1xf32>
    %555 = arith.subf %553, %510 : vector<8x1xf32>
    %556 = math.exp %555 : vector<8x1xf32>
    %557 = arith.mulf %556, %554 : vector<8x1xf32>
    %558 = vector.extract_strided_slice %442 {offsets = [32, 0], sizes = [8, 32], strides = [1, 1]} : vector<64x32xf32> to vector<8x32xf32>
    %559 = vector.broadcast %557 : vector<8x1xf32> to vector<8x32xf32>
    %560 = arith.mulf %559, %558 : vector<8x32xf32>
    %561 = arith.addf %551, %560 : vector<8x32xf32>
    %562 = arith.addf %552, %557 : vector<8x1xf32>
    %563 = vector.extract_strided_slice %453 {offsets = [40, 0], sizes = [8, 1], strides = [1, 1]} : vector<64x1xf32> to vector<8x1xf32>
    %564 = vector.extract_strided_slice %1 {offsets = [40, 0], sizes = [8, 1], strides = [1, 1]} : vector<64x1xf32> to vector<8x1xf32>
    %565 = arith.subf %563, %510 : vector<8x1xf32>
    %566 = math.exp %565 : vector<8x1xf32>
    %567 = arith.mulf %566, %564 : vector<8x1xf32>
    %568 = vector.extract_strided_slice %442 {offsets = [40, 0], sizes = [8, 32], strides = [1, 1]} : vector<64x32xf32> to vector<8x32xf32>
    %569 = vector.broadcast %567 : vector<8x1xf32> to vector<8x32xf32>
    %570 = arith.mulf %569, %568 : vector<8x32xf32>
    %571 = arith.addf %561, %570 : vector<8x32xf32>
    %572 = arith.addf %562, %567 : vector<8x1xf32>
    %573 = vector.extract_strided_slice %453 {offsets = [48, 0], sizes = [8, 1], strides = [1, 1]} : vector<64x1xf32> to vector<8x1xf32>
    %574 = vector.extract_strided_slice %1 {offsets = [48, 0], sizes = [8, 1], strides = [1, 1]} : vector<64x1xf32> to vector<8x1xf32>
    %575 = arith.subf %573, %510 : vector<8x1xf32>
    %576 = math.exp %575 : vector<8x1xf32>
    %577 = arith.mulf %576, %574 : vector<8x1xf32>
    %578 = vector.extract_strided_slice %442 {offsets = [48, 0], sizes = [8, 32], strides = [1, 1]} : vector<64x32xf32> to vector<8x32xf32>
    %579 = vector.broadcast %577 : vector<8x1xf32> to vector<8x32xf32>
    %580 = arith.mulf %579, %578 : vector<8x32xf32>
    %581 = arith.addf %571, %580 : vector<8x32xf32>
    %582 = arith.addf %572, %577 : vector<8x1xf32>
    %583 = vector.extract_strided_slice %453 {offsets = [56, 0], sizes = [8, 1], strides = [1, 1]} : vector<64x1xf32> to vector<8x1xf32>
    %584 = vector.extract_strided_slice %1 {offsets = [56, 0], sizes = [8, 1], strides = [1, 1]} : vector<64x1xf32> to vector<8x1xf32>
    %585 = arith.subf %583, %510 : vector<8x1xf32>
    %586 = math.exp %585 : vector<8x1xf32>
    %587 = arith.mulf %586, %584 : vector<8x1xf32>
    %588 = vector.extract_strided_slice %442 {offsets = [56, 0], sizes = [8, 32], strides = [1, 1]} : vector<64x32xf32> to vector<8x32xf32>
    %589 = vector.broadcast %587 : vector<8x1xf32> to vector<8x32xf32>
    %590 = arith.mulf %589, %588 : vector<8x32xf32>
    %591 = arith.addf %581, %590 : vector<8x32xf32>
    %592 = arith.addf %582, %587 : vector<8x1xf32>
    %cst_65 = arith.constant 0.000000e+00 : f32
    %593 = vector.broadcast %cst_65 : f32 to vector<8x1xf32>
    %594 = arith.subf %593, %510 : vector<8x1xf32>
    %595 = math.exp %594 : vector<8x1xf32>
    %cst_66 = arith.constant 9.99999974E-5 : f32
    %596 = vector.broadcast %cst_66 : f32 to vector<8x1xf32>
    %597 = arith.mulf %596, %595 : vector<8x1xf32>
    %598 = arith.addf %592, %597 : vector<8x1xf32>
    %599 = tpu.reciprocal %598 {approx = true} : vector<8x1xf32> -> vector<8x1xf32>
    %600 = arith.mulf %598, %599 : vector<8x1xf32>
    %cst_67 = arith.constant 2.000000e+00 : f32
    %601 = vector.broadcast %cst_67 : f32 to vector<8x1xf32>
    %602 = arith.subf %601, %600 : vector<8x1xf32>
    %603 = arith.mulf %599, %602 : vector<8x1xf32>
    %604 = vector.broadcast %603 : vector<8x1xf32> to vector<8x32xf32>
    %605 = arith.mulf %591, %604 : vector<8x32xf32>
    %c0_68 = arith.constant 0 : index
    %c0_69 = arith.constant 0 : index
    %606 = vector.load %arg10[%c0_68, %c0_69] : memref<8x32xf32, #tpu.memory_space<vmem>>, vector<8x32xf32>
    tpu.vector_store %arg10[%c0_68, %c0_69], %605 {strides = array<i32>} : memref<8x32xf32, #tpu.memory_space<vmem>>, vector<8x32xf32>,
    return
  }
}

</mosaic_0001>

<bundles_post_ra>
// kernel: tpu_custom_call.1
= control target key start
LH: loop header
LB: loop body
LE: loop exit
PB: predicated region body
PF: predicated region fallthrough
CT: control target
= control target key end

     0   :  { %vm61_vm0 = vcmask 130048   ;;  %v2299_v12 = vmov 0.0|0.0   ;;  %s2939_s0 = inlined_call_operand.vmem [shape: f32[64,16], index: 0, kind: input, shape index: {}]   ;;  %s2940_s1 = inlined_call_operand.vmem [shape: f32[64,1], index: 1, kind: input, shape index: {}]   ;;  %s2941_s2 = inlined_call_operand.vmem [shape: f32[16,96], index: 2, kind: input, shape index: {}]   ;;  %s2942_s3 = inlined_call_operand.vmem [shape: f32[32,96], index: 3, kind: input, shape index: {}]   ;;  %s2943_s4 = inlined_call_operand.vmem [shape: f32[1,96], index: 4, kind: input, shape index: {}]   ;;  %s2944_s5 = inlined_call_operand.vmem [shape: f32[1,16], index: 5, kind: input, shape index: {}]   ;;  %s2945_s6 = inlined_call_operand.vmem [shape: f32[1,16], index: 6, kind: input, shape index: {}]   ;;  %s2946_s7 = inlined_call_operand.vmem [shape: f32[32,32], index: 7, kind: input, shape index: {}]   ;;  %s2947_s8 = inlined_call_operand.vmem [shape: f32[1,32], index: 8, kind: input, shape index: {}]   ;;  %s2948_s9 = inlined_call_operand.vmem [shape: f32[1,32], index: 9, kind: input, shape index: {}]   ;;  %s2949_s10 = inlined_call_operand.hbm [shape: f32[8,32], index: 10, kind: output, shape index: {}]  }
   0x1   :  { %v52_v0 = vld [vmem:[%s2941_s2] sm:$0xff]  ;;  %v53_v1 = vld [vmem:[%s2941_s2 + $0x8] sm:$0xff]  ;;  %v42_v9 = vld [vmem:[%s2939_s0 + $0x30] sm:$0xff] }
   0x2   :  { %v40_v2 = vld [vmem:[%s2939_s0 + $0x20] sm:$0xff]  ;;  %v2064_v3 = vpack.c.bf16 %v53_v1, %v52_v0  ;;  %v192_v5 = vld [vmem:[%s2942_s3 + $0x8] sm:$0xff]  ;;  %v193_v13 = vld [vmem:[%s2942_s3 + $0x10] sm:$0xff] }
   0x3   :  { %1950 = vmatprep.mubr.msk.f32.mxu1 %vm61_vm0, %v40_v2  ;;  %v191_v4 = vld [vmem:[%s2942_s3] sm:$0xff]  ;;  %v41_v7 = vld [vmem:[%s2939_s0 + $0x28] sm:$0xff]  ;;  %v194_v14 = vld [vmem:[%s2942_s3 + $0x18] sm:$0xff] }
   0x4   :  { %v36_v6 = vld [vmem:[%s2939_s0] sm:$0xff]  ;;  %2124 = vmatprep.subr.bf16.mxu1 %v2064_v3  ;;  %2065 = vmatprep.subr.bf16.mxu0 %v2064_v3  ;;  %v2388_v8 = vpack.c.bf16 %v192_v5, %v191_v4  ;;  %v37_v10 = vld [vmem:[%s2939_s0 + $0x8] sm:$0xff] }
   0x5   :  { %2125 = vmatpush3.bf16.msra.mxu1 %v2064_v3  ;;  %2067 = vmatpush3.bf16.msra.mxu0 %v2064_v3  ;;  %v1846_v11 = vld [vmem:[%s2945_s6] ss:$0 sm:$0xff] }
   0x6   :  { %2068 = vmatprep.subr.bf16.mxu1 %v2299_v12  ;;  %1944 = vmatprep.mubr.msk.f32.mxu0 %vm61_vm0, %v36_v6 }
   0x7   :  { %15 = vsyncpa [#allocation3], 0  ;;  %s2300_s16 = smov 80   ;;  %2080 = vmatprep.subr.bf16.mxu0 %v2299_v12  ;;  %v1845_v15 = vld [vmem:[%s2944_s5] ss:$0 sm:$0xff]  ;;  %v43_v16 = vld [vmem:[%s2939_s0 + $0x38] sm:$0xff]  ;;  %v2418_v17 = vpack.c.bf16 %v194_v14, %v193_v13 }
   0x8   :  { %310 = vrot.lane.b32.xlu0 %v1846_v11, %s2300_s16  ;;  %1951 = vmatmul.mubr.msk.f32.vlgmr.msra.gmra.mrb[0].mxu1 %vm61_vm0, %v41_v7  ;;  %s2301_s3 = smov 32   ;;  %vm2302_vm1 = vmmov 0   ;;  %v2303_v18 = vmov 0.0   ;;  %s2304_s5 = smov 96   ;;  %v2457_v31 = vld [vmem:[%s2943_s4] ss:$0 sm:$0xff] }
   0x9   :  { %1945 = vmatmul.mubr.msk.f32.vlgmr.msra.gmra.mrb[0].mxu0 %vm61_vm0, %v37_v10  ;;  %2070 = vmatpush3.bf16.msra.mxu1 %v2388_v8  ;;  %v2305_v48 = vmov 0   ;;  %s2306_s4 = smov 112   ;;  %v51_v56 = vld [vmem:[%s2940_s1 + $0x38] sm:$0xff]  ;;  %s2307_s24 = smov 16   ;;  %vm197_vm2 = vcmask 261120  }
   0xa   :  { %1953 = vmatprep.mubr.msk.f32.mxu1 %vm61_vm0, %v42_v9  ;;  %2071 = vmatprep.subr.bf16.mxu1 %v2299_v12  ;;  %s2308_s2 = smov 64   ;;  %s2309_s25 = smov 48  }
   0xb   :  { %2082 = vmatpush3.bf16.msra.mxu0 %v2388_v8  ;;  %2138 = vset.pattern.permute.xlu0 %v2305_v48 }
   0xc   :  { %290 = vrot.lane.b32.xlu0 %v1845_v15, %s2301_s3  ;;  %2083 = vmatprep.subr.bf16.mxu0 %v2299_v12 }
   0xd   :  { %1954 = vmatmul.mubr.msk.f32.gmra.mrb[2].mxu1 %vm61_vm0, %v43_v16  ;;  %2139 = vset.pattern.permute.xlu1 %v2305_v48  ;;  %v50_v48 = vld [vmem:[%s2940_s1 + $0x30] sm:$0xff] }
   0xe   :  { %2073 = vmatpush3.bf16.msra.mxu1 %v2418_v17  ;;  %1964 = vmatprep.mubr.msk.f32.mxu1 %vm2302_vm1, %v2303_v18 }
   0xf   :  { %2074 = vmatprep.subr.bf16.mxu1 %v2299_v12  ;;  %2085 = vmatpush3.bf16.msra.mxu0 %v2418_v17 }
  0x10   :  { %2092 = vmatprep.subr.bf16.mxu0 %v2299_v12 }
  0x11   :  { %1965 = vmatmul.mubr.f32.vlgmr.msra.gmra.mrb[4].mxu1 %v2303_v18 }
  0x12   :  { %2076 = vmatpush3.bf16.msra.mxu1 %v2388_v8  ;;  %1975 = vmatprep.mubr.msk.f32.mxu1 %vm2302_vm1, %v2303_v18 }
  0x13   :  { %2077 = vmatprep.subr.bf16.mxu1 %v2299_v12 }
  0x16   :  { %2079 = vmatpush3.bf16.msra.mxu1 %v2418_v17 }
  0x17   :  { %2086 = vmatprep.subr.bf16.mxu1 %v2299_v12 }
  0x7a   :  { %v2444_v24 = vpop.permute.xlu0 %310 }
  0x7e   :  { %v2449_v29 = vpop.permute.xlu0 %290 }
  0xdb   :  { %v2438_v19 = vpop.f32.mrb[0].mxu1 }
  0xdc   :  { %v2440_v20 = vpop.f32.mrb[0].mxu0  ;;  %v2442_v21 = vpop.f32.mrb[1].mxu1 }
  0xdd   :  { %v152_v22 = vpop.f32.mrb[1].mxu0  ;;  %v2501_v13 = vadd.f32 %v2440_v20, %v2457_v31 }
  0xde   :  { %v2463_v33 = vadd.f32 %v2457_v31, %v152_v22 }
  0xe0   :  { %v1955_v23 = vpop.f32.mrb[2].mxu1 }
  0xe1   :  { %v2446_v25 = vpop.f32.mrb[3].mxu1  ;;  %v2460_v32 = vadd.f32 %v1955_v23, %v2457_v31 }
  0xe2   :  { %v2505_v14 = vadd.f32 %v2457_v31, %v2446_v25 }
  0xe4   :  { %v267_v26 = vpop.f32.mrb[4].mxu1 }
  0xe5   :  { %v1966_v27 = vpop.f32.mrb[5].mxu1  ;;  %v313_v28 = vadd.f32 %v2444_v24, %v267_v26  ;;  %v293_v30 = vadd.f32 %v2449_v29, %v267_v26  ;;  %v278_v34 = vadd.f32 %v267_v26, %v2460_v32  ;;  %v271_v35 = vadd.f32 %v267_v26, %v2463_v33 }
  0xe7   :  { %315 = vrot.lane.b32.xlu1 %v313_v28, %s2304_s5  ;;  %v1844_v36 = vmul.f32 -1.442695, %v278_v34  ;;  %v1843_v37 = vmul.f32 -1.442695, %v271_v35 }
  0xe9   :  { %2140 = vpow2.f32 %v1844_v36 }
  0xea   :  { %2142 = vpow2.f32 %v1843_v37 }
  0xeb   :  { %295 = vrot.lane.b32.xlu1 %v293_v30, %s2304_s5 }
  0xf3   :  { %v2141_v38 = vpop.eup %2140 }
  0xf4   :  { %v282_v39 = vadd.f32 1.0, %v2141_v38  ;;  %v2143_v40 = vpop.eup %2142 }
  0xf5   :  { %v275_v41 = vadd.f32 1.0, %v2143_v40 }
  0xf6   :  { %2144 = vrcp.f32 %v282_v39 }
  0xf7   :  { %2146 = vrcp.f32 %v275_v41 }
 0x100   :  { %v2145_v42 = vpop.eup %2144 }
 0x101   :  { %v2147_v45 = vpop.eup %2146 }
 0x159   :  { %v316_v43 = vpop.permute.xlu1 %315 }
 0x15a   :  { %v318_v44 = vmul.f32 %v2145_v42, %v316_v43 }
 0x15c   :  { %320 = vrot.lane.b32.xlu0 %v318_v44, %s2301_s3 }
 0x15d   :  { %v296_v46 = vpop.permute.xlu1 %295 }
 0x15e   :  { %v298_v47 = vmul.f32 %v2147_v45, %v296_v46 }
 0x160   :  { %300 = vrot.lane.b32.xlu1 %v298_v47, %s2301_s3 }
 0x1ce   :  { %v321_v49 = vpop.permute.xlu0 %320 }
 0x1cf   :  { %v323_v50 = vadd.f32 %v321_v49, %v2460_v32  ;;  %v38_v49 = vld [vmem:[%s2939_s0 + $0x10] sm:$0xff] }
 0x1d0   :  { %1947 = vmatprep.mubr.msk.f32.mxu0 %vm61_vm0, %v38_v49  ;;  %v2584_v49 = vld [vmem:[%s2940_s1 + $0x28] sm:$0xff] }
 0x1d1   :  { %2148 = vtanh.f32 %v323_v50  ;;  %v39_v50 = vld [vmem:[%s2939_s0 + $0x18] sm:$0xff]  ;;  %vm1699_vm8 = vcmp.gt.f32.partialorder %v2584_v49, 0.5 }
 0x1d2   :  { %v301_v51 = vpop.permute.xlu1 %300  ;;  %1948 = vmatmul.mubr.msk.f32.gmra.mrb[2].mxu0 %vm61_vm0, %v39_v50 }
 0x1d3   :  { %v303_v52 = vadd.f32 %v301_v51, %v2463_v33  ;;  %1986 = vmatprep.mubr.msk.f32.mxu0 %vm2302_vm1, %v2303_v18 }
 0x1d5   :  { %2150 = vtanh.f32 %v303_v52 }
 0x1db   :  { %v2149_v53 = vpop.eup %2148 }
 0x1dc   :  { %v336_v54 = vsub.f32 0.0, %v2149_v53 }
 0x1de   :  { %338 = vrot.lane.b32.xlu0 %v336_v54, %s2306_s4 }
 0x1df   :  { %v2151_v55 = vpop.eup %2150 }
 0x1e0   :  { %v325_v57 = vsub.f32 0.0, %v2151_v55 }
 0x1e2   :  { %327 = vrot.lane.b32.xlu1 %v325_v57, %s2306_s4  ;;  %349 = vperm.xlu0 %2138, %v51_v56  }
 0x250   :  { %v339_v58 = vpop.permute.xlu0 %338 }
 0x251   :  { %v341_v59 = vmul.f32 %v2145_v42, %v339_v58 }
 0x253   :  { %343 = vrot.lane.b32.xlu1 %v341_v59, %s2307_s24 }
 0x254   :  { %v328_v60 = vpop.permute.xlu1 %327 }
 0x255   :  { %v330_v61 = vmul.f32 %v2147_v45, %v328_v60 }
 0x257   :  { %332 = vrot.lane.b32.xlu1 %v330_v61, %s2307_s24 }
 0x261   :  { %v350_v63 = vpop.permute.xlu0 %349 }
 0x2c5   :  { %v344_v62 = vpop.permute.xlu1 %343 }
 0x2c6   :  { %v346_v0 = vadd.f32 %v2149_v53, %v344_v62 }
 0x2c8   :  { %v352_v1 = vmul.f32 %v350_v63, %v346_v0  ;;  %v2538_v63 = vpop.f32.mrb[2].mxu0 }
 0x2c9   :  { %v333_v2 = vpop.permute.xlu1 %332  ;;  %v162_v0 = vpop.f32.mrb[3].mxu0 }
 0x2ca   :  { %v335_v3 = vadd.f32 %v2151_v55, %v333_v2  ;;  %359 = vrot.lane.b32.xlu1 %v352_v1, %s2308_s2 }
 0x2cc   :  { %355 = vrot.lane.b32.xlu0 %v335_v3, %s2304_s5 }
 0x33c   :  { %v2478_v4 = vpop.permute.xlu1 %359 }
 0x33e   :  { %v2480_v5 = vpop.permute.xlu0 %355 }
 0x33f   :  { %v2485_v6 = vsel %vm61_vm0, %v2480_v5, %v2478_v4 }
 0x340   :  { %1976 = vmatmul.mubr.msk.f32.vlgmr.msra.gmra.mrb[6].mxu1 %vm197_vm2, %v2485_v6 }
 0x341   :  { %2088 = vmatpush3.bf16.msra.mxu1 %v2388_v8  ;;  %1997 = vmatprep.mubr.msk.f32.mxu1 %vm2302_vm1, %v2303_v18 }
 0x342   :  { %2089 = vmatprep.subr.bf16.mxu1 %v2299_v12 }
 0x345   :  { %2091 = vmatpush3.bf16.msra.mxu1 %v2418_v17 }
 0x346   :  { %2098 = vmatprep.subr.bf16.mxu1 %v2299_v12 }
 0x413   :  { %v432_v7 = vpop.f32.mrb[6].mxu1 }
 0x414   :  { %v1977_v9 = vpop.f32.mrb[7].mxu1  ;;  %v462_v10 = vadd.f32 %v432_v7, %v2444_v24  ;;  %v450_v11 = vadd.f32 %v432_v7, %v2449_v29  ;;  %v436_v15 = vadd.f32 %v432_v7, %v2501_v13  ;;  %v443_v16 = vadd.f32 %v432_v7, %v2505_v14 }
 0x416   :  { %464 = vrot.lane.b32.xlu0 %v462_v10, %s2304_s5  ;;  %452 = vrot.lane.b32.xlu1 %v450_v11, %s2304_s5  ;;  %v1848_v22 = vmul.f32 -1.442695, %v436_v15  ;;  %v1849_v23 = vmul.f32 -1.442695, %v443_v16  ;;  %v2563_v15 = vadd.f32 %v2457_v31, %v162_v0  ;;  %v2567_v16 = vadd.f32 %v2438_v19, %v2457_v31 }
 0x418   :  { %2152 = vpow2.f32 %v1848_v22 }
 0x419   :  { %2154 = vpow2.f32 %v1849_v23 }
 0x422   :  { %v2153_v26 = vpop.eup %2152 }
 0x423   :  { %v2155_v27 = vpop.eup %2154  ;;  %v440_v28 = vadd.f32 1.0, %v2153_v26 }
 0x424   :  { %v447_v30 = vadd.f32 1.0, %v2155_v27 }
 0x425   :  { %2156 = vrcp.f32 %v440_v28 }
 0x426   :  { %2158 = vrcp.f32 %v447_v30 }
 0x42f   :  { %v2157_v20 = vpop.eup %2156 }
 0x430   :  { %v2159_v34 = vpop.eup %2158 }
 0x488   :  { %v465_v35 = vpop.permute.xlu0 %464  ;;  %v453_v36 = vpop.permute.xlu1 %452 }
 0x489   :  { %v467_v25 = vmul.f32 %v2159_v34, %v465_v35  ;;  %v455_v37 = vmul.f32 %v2157_v20, %v453_v36 }
 0x48b   :  { %469 = vrot.lane.b32.xlu0 %v467_v25, %s2301_s3  ;;  %457 = vrot.lane.b32.xlu1 %v455_v37, %s2301_s3 }
 0x4fd   :  { %v470_v38 = vpop.permute.xlu0 %469  ;;  %v458_v39 = vpop.permute.xlu1 %457 }
 0x4fe   :  { %v472_v40 = vadd.f32 %v470_v38, %v2505_v14  ;;  %v460_v41 = vadd.f32 %v458_v39, %v2501_v13 }
 0x500   :  { %2160 = vtanh.f32 %v472_v40 }
 0x501   :  { %2162 = vtanh.f32 %v460_v41 }
 0x50a   :  { %v2161_v42 = vpop.eup %2160 }
 0x50b   :  { %v2163_v43 = vpop.eup %2162  ;;  %490 = vrot.lane.b32.xlu0 %v2161_v42, %s2308_s2 }
 0x50c   :  { %475 = vrot.lane.b32.xlu1 %v2163_v43, %s2304_s5 }
 0x57d   :  { %v491_v44 = vpop.permute.xlu0 %490 }
 0x57e   :  { %v493_v45 = vsub.f32 %v2485_v6, %v491_v44  ;;  %v476_v46 = vpop.permute.xlu1 %475 }
 0x57f   :  { %v478_v47 = vsub.f32 %v2485_v6, %v476_v46 }
 0x580   :  { %495 = vrot.lane.b32.xlu0 %v493_v45, %s2309_s25 }
 0x581   :  { %480 = vrot.lane.b32.xlu1 %v478_v47, %s2307_s24 }
 0x584   :  { %510 = vperm.xlu0 %2138, %v50_v48  }
 0x588   :  { %504 = vrot.lane.b32.xlu0 %v2485_v6, %s2308_s2 }
 0x5f2   :  { %v496_v51 = vpop.permute.xlu0 %495 }
 0x5f3   :  { %v498_v52 = vmul.f32 %v2159_v34, %v496_v51  ;;  %v481_v53 = vpop.permute.xlu1 %480 }
 0x5f4   :  { %v483_v54 = vmul.f32 %v2157_v20, %v481_v53 }
 0x5f5   :  { %500 = vrot.lane.b32.xlu1 %v498_v52, %s2307_s24 }
 0x5f9   :  { %485 = vrot.lane.b32.xlu1 %v483_v54, %s2307_s24 }
 0x603   :  { %v511_v55 = vpop.permute.xlu0 %510 }
 0x607   :  { %v505_v58 = vpop.permute.xlu0 %504 }
 0x667   :  { %v501_v56 = vpop.permute.xlu1 %500 }
 0x668   :  { %v503_v57 = vadd.f32 %v2161_v42, %v501_v56 }
 0x66a   :  { %v507_v59 = vsub.f32 %v503_v57, %v505_v58 }
 0x66b   :  { %v486_v60 = vpop.permute.xlu1 %485 }
 0x66c   :  { %v488_v61 = vadd.f32 %v2163_v43, %v486_v60  ;;  %v513_v62 = vmul.f32 %v511_v55, %v507_v59 }
 0x66e   :  { %515 = vrot.lane.b32.xlu0 %v513_v62, %s2308_s2  ;;  %520 = vrot.lane.b32.xlu1 %v488_v61, %s2304_s5 }
 0x6e0   :  { %v516_v1 = vpop.permute.xlu0 %515  ;;  %v2543_v3 = vpop.permute.xlu1 %520 }
 0x6e1   :  { %v2541_v2 = vadd.f32 %v516_v1, %v2485_v6 }
 0x6e3   :  { %v2548_v7 = vsel %vm61_vm0, %v2543_v3, %v2541_v2 }
 0x6e4   :  { %1987 = vmatmul.mubr.msk.f32.vlgmr.msra.gmra.mrb[4].mxu0 %vm197_vm2, %v2548_v7 }
 0x6e5   :  { %2094 = vmatpush3.bf16.msra.mxu0 %v2388_v8  ;;  %2008 = vmatprep.mubr.msk.f32.mxu0 %vm2302_vm1, %v2303_v18 }
 0x6e6   :  { %2095 = vmatprep.subr.bf16.mxu0 %v2299_v12 }
 0x6e9   :  { %2097 = vmatpush3.bf16.msra.mxu0 %v2418_v17 }
 0x6ea   :  { %2104 = vmatprep.subr.bf16.mxu0 %v2299_v12 }
 0x7b7   :  { %v593_v6 = vpop.f32.mrb[4].mxu0 }
 0x7b8   :  { %v1988_v9 = vpop.f32.mrb[5].mxu0  ;;  %v623_v10 = vadd.f32 %v593_v6, %v2444_v24  ;;  %v611_v11 = vadd.f32 %v593_v6, %v2449_v29  ;;  %v597_v22 = vadd.f32 %v593_v6, %v2563_v15  ;;  %v604_v23 = vadd.f32 %v593_v6, %v2567_v16 }
 0x7ba   :  { %625 = vrot.lane.b32.xlu0 %v623_v10, %s2304_s5  ;;  %613 = vrot.lane.b32.xlu1 %v611_v11, %s2304_s5  ;;  %v1851_v26 = vmul.f32 -1.442695, %v597_v22  ;;  %v1852_v27 = vmul.f32 -1.442695, %v604_v23  ;;  %v2617_v22 = vadd.f32 %v2538_v63, %v2457_v31  ;;  %v2621_v23 = vadd.f32 %v2457_v31, %v2442_v21 }
 0x7bc   :  { %2164 = vpow2.f32 %v1851_v26 }
 0x7bd   :  { %2166 = vpow2.f32 %v1852_v27 }
 0x7c6   :  { %v2165_v28 = vpop.eup %2164 }
 0x7c7   :  { %v2167_v30 = vpop.eup %2166  ;;  %v601_v20 = vadd.f32 1.0, %v2165_v28 }
 0x7c8   :  { %v608_v34 = vadd.f32 1.0, %v2167_v30 }
 0x7c9   :  { %2168 = vrcp.f32 %v601_v20 }
 0x7ca   :  { %2170 = vrcp.f32 %v608_v34 }
 0x7d3   :  { %v2169_v35 = vpop.eup %2168 }
 0x7d4   :  { %v2171_v36 = vpop.eup %2170 }
 0x82c   :  { %v626_v25 = vpop.permute.xlu0 %625  ;;  %v614_v37 = vpop.permute.xlu1 %613 }
 0x82d   :  { %v628_v19 = vmul.f32 %v2171_v36, %v626_v25  ;;  %v616_v38 = vmul.f32 %v2169_v35, %v614_v37 }
 0x82f   :  { %630 = vrot.lane.b32.xlu0 %v628_v19, %s2301_s3  ;;  %618 = vrot.lane.b32.xlu1 %v616_v38, %s2301_s3 }
 0x8a1   :  { %v631_v39 = vpop.permute.xlu0 %630  ;;  %v619_v40 = vpop.permute.xlu1 %618 }
 0x8a2   :  { %v633_v41 = vadd.f32 %v631_v39, %v2567_v16  ;;  %v621_v42 = vadd.f32 %v619_v40, %v2563_v15 }
 0x8a4   :  { %2172 = vtanh.f32 %v633_v41 }
 0x8a5   :  { %2174 = vtanh.f32 %v621_v42 }
 0x8ae   :  { %v2173_v43 = vpop.eup %2172 }
 0x8af   :  { %v2175_v44 = vpop.eup %2174  ;;  %651 = vrot.lane.b32.xlu0 %v2173_v43, %s2308_s2 }
 0x8b0   :  { %636 = vrot.lane.b32.xlu1 %v2175_v44, %s2304_s5 }
 0x921   :  { %v652_v45 = vpop.permute.xlu0 %651 }
 0x922   :  { %v654_v46 = vsub.f32 %v2548_v7, %v652_v45  ;;  %v637_v47 = vpop.permute.xlu1 %636 }
 0x923   :  { %v639_v48 = vsub.f32 %v2548_v7, %v637_v47 }
 0x924   :  { %656 = vrot.lane.b32.xlu0 %v654_v46, %s2309_s25 }
 0x925   :  { %641 = vrot.lane.b32.xlu1 %v639_v48, %s2307_s24  ;;  %v2638_v48 = vld [vmem:[%s2940_s1 + $0x20] sm:$0xff] }
 0x926   :  { %vm1696_vm7 = vcmp.gt.f32.partialorder %v2638_v48, 0.5 }
 0x928   :  { %671 = vperm.xlu0 %2138, %v2584_v49  }
 0x92c   :  { %665 = vrot.lane.b32.xlu0 %v2548_v7, %s2308_s2 }
 0x996   :  { %v657_v50 = vpop.permute.xlu0 %656 }
 0x997   :  { %v659_v51 = vmul.f32 %v2171_v36, %v657_v50  ;;  %v642_v52 = vpop.permute.xlu1 %641 }
 0x998   :  { %v644_v53 = vmul.f32 %v2169_v35, %v642_v52 }
 0x999   :  { %661 = vrot.lane.b32.xlu1 %v659_v51, %s2307_s24 }
 0x99d   :  { %646 = vrot.lane.b32.xlu1 %v644_v53, %s2307_s24 }
 0x9a7   :  { %v672_v54 = vpop.permute.xlu0 %671 }
 0x9ab   :  { %v666_v57 = vpop.permute.xlu0 %665 }
 0xa0b   :  { %v662_v55 = vpop.permute.xlu1 %661 }
 0xa0c   :  { %v664_v56 = vadd.f32 %v2173_v43, %v662_v55 }
 0xa0e   :  { %v668_v58 = vsub.f32 %v664_v56, %v666_v57 }
 0xa0f   :  { %v647_v59 = vpop.permute.xlu1 %646 }
 0xa10   :  { %v649_v60 = vadd.f32 %v2175_v44, %v647_v59  ;;  %v674_v61 = vmul.f32 %v672_v54, %v668_v58 }
 0xa12   :  { %676 = vrot.lane.b32.xlu0 %v674_v61, %s2308_s2  ;;  %681 = vrot.lane.b32.xlu1 %v649_v60, %s2304_s5 }
 0xa84   :  { %v677_v62 = vpop.permute.xlu0 %676  ;;  %v2596_v1 = vpop.permute.xlu1 %681 }
 0xa85   :  { %v2594_v0 = vadd.f32 %v677_v62, %v2548_v7 }
 0xa87   :  { %v2601_v6 = vsel %vm61_vm0, %v2596_v1, %v2594_v0 }
 0xa88   :  { %1998 = vmatmul.mubr.msk.f32.vlgmr.msra.gmra.mrb[8].mxu1 %vm197_vm2, %v2601_v6 }
 0xa89   :  { %2100 = vmatpush3.bf16.msra.mxu1 %v2388_v8  ;;  %2019 = vmatprep.mubr.msk.f32.mxu1 %vm2302_vm1, %v2303_v18 }
 0xa8a   :  { %2101 = vmatprep.subr.bf16.mxu1 %v2299_v12 }
 0xa8d   :  { %2103 = vmatpush3.bf16.msra.mxu1 %v2418_v17 }
 0xa8e   :  { %2110 = vmatprep.subr.bf16.mxu1 %v2299_v12 }
 0xb5b   :  { %v754_v7 = vpop.f32.mrb[8].mxu1 }
 0xb5c   :  { %v1999_v9 = vpop.f32.mrb[9].mxu1  ;;  %v784_v10 = vadd.f32 %v754_v7, %v2444_v24  ;;  %v772_v11 = vadd.f32 %v754_v7, %v2449_v29  ;;  %v758_v26 = vadd.f32 %v754_v7, %v2617_v22  ;;  %v765_v27 = vadd.f32 %v754_v7, %v2621_v23 }
 0xb5e   :  { %786 = vrot.lane.b32.xlu0 %v784_v10, %s2304_s5  ;;  %774 = vrot.lane.b32.xlu1 %v772_v11, %s2304_s5  ;;  %v1854_v28 = vmul.f32 -1.442695, %v758_v26  ;;  %v1855_v30 = vmul.f32 -1.442695, %v765_v27 }
 0xb60   :  { %2176 = vpow2.f32 %v1854_v28 }
 0xb61   :  { %2178 = vpow2.f32 %v1855_v30 }
 0xb6a   :  { %v2177_v20 = vpop.eup %2176 }
 0xb6b   :  { %v2179_v34 = vpop.eup %2178  ;;  %v762_v35 = vadd.f32 1.0, %v2177_v20 }
 0xb6c   :  { %v769_v36 = vadd.f32 1.0, %v2179_v34 }
 0xb6d   :  { %2180 = vrcp.f32 %v762_v35 }
 0xb6e   :  { %2182 = vrcp.f32 %v769_v36 }
 0xb77   :  { %v2181_v63 = vpop.eup %2180 }
 0xb78   :  { %v2183_v25 = vpop.eup %2182 }
 0xbd0   :  { %v787_v37 = vpop.permute.xlu0 %786  ;;  %v775_v19 = vpop.permute.xlu1 %774 }
 0xbd1   :  { %v789_v21 = vmul.f32 %v2183_v25, %v787_v37  ;;  %v777_v31 = vmul.f32 %v2181_v63, %v775_v19 }
 0xbd3   :  { %791 = vrot.lane.b32.xlu0 %v789_v21, %s2301_s3  ;;  %779 = vrot.lane.b32.xlu1 %v777_v31, %s2301_s3 }
 0xc45   :  { %v792_v38 = vpop.permute.xlu0 %791  ;;  %v780_v39 = vpop.permute.xlu1 %779 }
 0xc46   :  { %v794_v40 = vadd.f32 %v792_v38, %v2621_v23  ;;  %v782_v41 = vadd.f32 %v780_v39, %v2617_v22 }
 0xc48   :  { %2184 = vtanh.f32 %v794_v40 }
 0xc49   :  { %2186 = vtanh.f32 %v782_v41 }
 0xc52   :  { %v2185_v42 = vpop.eup %2184 }
 0xc53   :  { %v2187_v43 = vpop.eup %2186  ;;  %812 = vrot.lane.b32.xlu0 %v2185_v42, %s2308_s2 }
 0xc54   :  { %797 = vrot.lane.b32.xlu1 %v2187_v43, %s2304_s5 }
 0xcc5   :  { %v813_v44 = vpop.permute.xlu0 %812 }
 0xcc6   :  { %v815_v45 = vsub.f32 %v2601_v6, %v813_v44  ;;  %v798_v46 = vpop.permute.xlu1 %797 }
 0xcc7   :  { %v800_v47 = vsub.f32 %v2601_v6, %v798_v46 }
 0xcc8   :  { %817 = vrot.lane.b32.xlu0 %v815_v45, %s2309_s25 }
 0xcc9   :  { %802 = vrot.lane.b32.xlu1 %v800_v47, %s2307_s24 }
 0xccc   :  { %832 = vperm.xlu0 %2138, %v2638_v48  }
 0xcd0   :  { %826 = vrot.lane.b32.xlu0 %v2601_v6, %s2308_s2 }
 0xd3a   :  { %v818_v50 = vpop.permute.xlu0 %817 }
 0xd3b   :  { %v820_v51 = vmul.f32 %v2183_v25, %v818_v50  ;;  %v803_v52 = vpop.permute.xlu1 %802 }
 0xd3c   :  { %v805_v53 = vmul.f32 %v2181_v63, %v803_v52 }
 0xd3d   :  { %822 = vrot.lane.b32.xlu1 %v820_v51, %s2307_s24 }
 0xd41   :  { %807 = vrot.lane.b32.xlu1 %v805_v53, %s2307_s24 }
 0xd4b   :  { %v833_v54 = vpop.permute.xlu0 %832 }
 0xd4f   :  { %v827_v57 = vpop.permute.xlu0 %826 }
 0xdaf   :  { %v823_v55 = vpop.permute.xlu1 %822 }
 0xdb0   :  { %v825_v56 = vadd.f32 %v2185_v42, %v823_v55 }
 0xdb2   :  { %v829_v58 = vsub.f32 %v825_v56, %v827_v57 }
 0xdb3   :  { %v808_v59 = vpop.permute.xlu1 %807 }
 0xdb4   :  { %v810_v60 = vadd.f32 %v2187_v43, %v808_v59  ;;  %v835_v61 = vmul.f32 %v833_v54, %v829_v58 }
 0xdb6   :  { %837 = vrot.lane.b32.xlu0 %v835_v61, %s2308_s2  ;;  %842 = vrot.lane.b32.xlu1 %v810_v60, %s2304_s5 }
 0xe28   :  { %v838_v62 = vpop.permute.xlu0 %837  ;;  %v2650_v9 = vpop.permute.xlu1 %842 }
 0xe29   :  { %v2648_v7 = vadd.f32 %v838_v62, %v2601_v6 }
 0xe2b   :  { %v2655_v10 = vsel %vm61_vm0, %v2650_v9, %v2648_v7 }
 0xe2c   :  { %2009 = vmatmul.mubr.msk.f32.vlgmr.msra.gmra.mrb[6].mxu0 %vm197_vm2, %v2655_v10 }
 0xe2d   :  { %2106 = vmatpush3.bf16.msra.mxu0 %v2388_v8  ;;  %2030 = vmatprep.mubr.msk.f32.mxu0 %vm2302_vm1, %v2303_v18 }
 0xe2e   :  { %2107 = vmatprep.subr.bf16.mxu0 %v2299_v12 }
 0xe31   :  { %2109 = vmatpush3.bf16.msra.mxu0 %v2418_v17 }
 0xeff   :  { %v915_v6 = vpop.f32.mrb[6].mxu0 }
 0xf00   :  { %v2010_v11 = vpop.f32.mrb[7].mxu0  ;;  %v945_v26 = vadd.f32 %v915_v6, %v2444_v24  ;;  %v933_v27 = vadd.f32 %v915_v6, %v2449_v29  ;;  %v919_v28 = vadd.f32 %v915_v6, %v2621_v23  ;;  %v926_v30 = vadd.f32 %v915_v6, %v2617_v22 }
 0xf02   :  { %947 = vrot.lane.b32.xlu0 %v945_v26, %s2304_s5  ;;  %935 = vrot.lane.b32.xlu1 %v933_v27, %s2304_s5  ;;  %v1857_v20 = vmul.f32 -1.442695, %v919_v28  ;;  %v1858_v34 = vmul.f32 -1.442695, %v926_v30 }
 0xf04   :  { %2188 = vpow2.f32 %v1857_v20 }
 0xf05   :  { %2190 = vpow2.f32 %v1858_v34 }
 0xf0e   :  { %v2189_v35 = vpop.eup %2188 }
 0xf0f   :  { %v2191_v36 = vpop.eup %2190  ;;  %v923_v63 = vadd.f32 1.0, %v2189_v35 }
 0xf10   :  { %v930_v25 = vadd.f32 1.0, %v2191_v36 }
 0xf11   :  { %2192 = vrcp.f32 %v923_v63 }
 0xf12   :  { %2194 = vrcp.f32 %v930_v25 }
 0xf1b   :  { %v2193_v37 = vpop.eup %2192 }
 0xf1c   :  { %v2195_v19 = vpop.eup %2194 }
 0xf74   :  { %v948_v21 = vpop.permute.xlu0 %947  ;;  %v936_v31 = vpop.permute.xlu1 %935 }
 0xf75   :  { %v950_v38 = vmul.f32 %v2195_v19, %v948_v21  ;;  %v938_v39 = vmul.f32 %v2193_v37, %v936_v31 }
 0xf77   :  { %952 = vrot.lane.b32.xlu0 %v950_v38, %s2301_s3  ;;  %940 = vrot.lane.b32.xlu1 %v938_v39, %s2301_s3 }
 0xfe9   :  { %v953_v40 = vpop.permute.xlu0 %952  ;;  %v941_v41 = vpop.permute.xlu1 %940 }
 0xfea   :  { %v955_v42 = vadd.f32 %v953_v40, %v2617_v22  ;;  %v943_v43 = vadd.f32 %v941_v41, %v2621_v23  ;;  %v2683_v22 = vld [vmem:[%s2940_s1 + $0x18] sm:$0xff] }
 0xfeb   :  { %vm1693_vm6 = vcmp.gt.f32.partialorder %v2683_v22, 0.5 }
 0xfec   :  { %2196 = vtanh.f32 %v955_v42 }
 0xfed   :  { %2198 = vtanh.f32 %v943_v43 }
 0xff6   :  { %v2197_v44 = vpop.eup %2196 }
 0xff7   :  { %v2199_v45 = vpop.eup %2198  ;;  %973 = vrot.lane.b32.xlu0 %v2197_v44, %s2308_s2 }
 0xff8   :  { %958 = vrot.lane.b32.xlu1 %v2199_v45, %s2304_s5 }
0x1069   :  { %v974_v46 = vpop.permute.xlu0 %973 }
0x106a   :  { %v976_v47 = vsub.f32 %v2655_v10, %v974_v46  ;;  %v959_v50 = vpop.permute.xlu1 %958 }
0x106b   :  { %v961_v51 = vsub.f32 %v2655_v10, %v959_v50 }
0x106c   :  { %978 = vrot.lane.b32.xlu0 %v976_v47, %s2309_s25 }
0x106d   :  { %963 = vrot.lane.b32.xlu1 %v961_v51, %s2307_s24 }
0x1070   :  { %993 = vperm.xlu0 %2138, %v2683_v22  }
0x1074   :  { %987 = vrot.lane.b32.xlu0 %v2655_v10, %s2308_s2 }
0x10de   :  { %v979_v23 = vpop.permute.xlu0 %978 }
0x10df   :  { %v981_v52 = vmul.f32 %v2195_v19, %v979_v23  ;;  %v964_v53 = vpop.permute.xlu1 %963 }
0x10e0   :  { %v966_v54 = vmul.f32 %v2193_v37, %v964_v53 }
0x10e1   :  { %983 = vrot.lane.b32.xlu1 %v981_v52, %s2307_s24 }
0x10e5   :  { %968 = vrot.lane.b32.xlu1 %v966_v54, %s2307_s24 }
0x10ef   :  { %v994_v55 = vpop.permute.xlu0 %993 }
0x10f3   :  { %v988_v58 = vpop.permute.xlu0 %987 }
0x1153   :  { %v984_v56 = vpop.permute.xlu1 %983 }
0x1154   :  { %v986_v57 = vadd.f32 %v2197_v44, %v984_v56 }
0x1156   :  { %v990_v59 = vsub.f32 %v986_v57, %v988_v58 }
0x1157   :  { %v969_v60 = vpop.permute.xlu1 %968 }
0x1158   :  { %v971_v61 = vadd.f32 %v2199_v45, %v969_v60  ;;  %v996_v62 = vmul.f32 %v994_v55, %v990_v59 }
0x115a   :  { %998 = vrot.lane.b32.xlu0 %v996_v62, %s2308_s2  ;;  %1003 = vrot.lane.b32.xlu1 %v971_v61, %s2304_s5 }
0x11cc   :  { %v999_v6 = vpop.permute.xlu0 %998  ;;  %v2695_v26 = vpop.permute.xlu1 %1003 }
0x11cd   :  { %v2693_v11 = vadd.f32 %v999_v6, %v2655_v10 }
0x11cf   :  { %v2700_v27 = vsel %vm61_vm0, %v2695_v26, %v2693_v11 }
0x11d0   :  { %2020 = vmatmul.mubr.msk.f32.vlgmr.msra.gmra.mrb[10].mxu1 %vm197_vm2, %v2700_v27 }
0x11d1   :  { %2112 = vmatpush3.bf16.msra.mxu1 %v2388_v8  ;;  %2041 = vmatprep.mubr.msk.f32.mxu1 %vm2302_vm1, %v2303_v18 }
0x11d2   :  { %2113 = vmatprep.subr.bf16.mxu1 %v2299_v12 }
0x11d5   :  { %2115 = vmatpush3.bf16.msra.mxu1 %v2418_v17 }
0x12a3   :  { %v1076_v10 = vpop.f32.mrb[10].mxu1 }
0x12a4   :  { %v2021_v28 = vpop.f32.mrb[11].mxu1  ;;  %v1106_v30 = vadd.f32 %v1076_v10, %v2444_v24  ;;  %v1094_v20 = vadd.f32 %v1076_v10, %v2449_v29  ;;  %v1080_v34 = vadd.f32 %v1076_v10, %v2567_v16  ;;  %v1087_v8 = vadd.f32 %v1076_v10, %v2563_v15 }
0x12a6   :  { %1108 = vrot.lane.b32.xlu0 %v1106_v30, %s2304_s5  ;;  %1096 = vrot.lane.b32.xlu1 %v1094_v20, %s2304_s5  ;;  %v1860_v35 = vmul.f32 -1.442695, %v1080_v34  ;;  %v1861_v18 = vmul.f32 -1.442695, %v1087_v8 }
0x12a8   :  { %2200 = vpow2.f32 %v1860_v35 }
0x12a9   :  { %2202 = vpow2.f32 %v1861_v18 }
0x12b2   :  { %v2201_v12 = vpop.eup %2200 }
0x12b3   :  { %v2203_v17 = vpop.eup %2202  ;;  %v1084_v36 = vadd.f32 1.0, %v2201_v12 }
0x12b4   :  { %v1091_v63 = vadd.f32 1.0, %v2203_v17 }
0x12b5   :  { %2204 = vrcp.f32 %v1084_v36 }
0x12b6   :  { %2206 = vrcp.f32 %v1091_v63 }
0x12bf   :  { %v2205_v25 = vpop.eup %2204 }
0x12c0   :  { %v2207_v37 = vpop.eup %2206 }
0x1318   :  { %v1109_v19 = vpop.permute.xlu0 %1108  ;;  %v1097_v21 = vpop.permute.xlu1 %1096 }
0x1319   :  { %v1111_v31 = vmul.f32 %v2207_v37, %v1109_v19  ;;  %v1099_v38 = vmul.f32 %v2205_v25, %v1097_v21 }
0x131b   :  { %1113 = vrot.lane.b32.xlu0 %v1111_v31, %s2301_s3  ;;  %1101 = vrot.lane.b32.xlu1 %v1099_v38, %s2301_s3 }
0x138d   :  { %v1114_v39 = vpop.permute.xlu0 %1113  ;;  %v1102_v40 = vpop.permute.xlu1 %1101 }
0x138e   :  { %v1116_v41 = vadd.f32 %v1114_v39, %v2563_v15  ;;  %v1104_v42 = vadd.f32 %v1102_v40, %v2567_v16  ;;  %v2728_v15 = vld [vmem:[%s2940_s1 + $0x10] sm:$0xff] }
0x138f   :  { %vm1690_vm5 = vcmp.gt.f32.partialorder %v2728_v15, 0.5 }
0x1390   :  { %2208 = vtanh.f32 %v1116_v41 }
0x1391   :  { %2210 = vtanh.f32 %v1104_v42 }
0x139a   :  { %v2209_v43 = vpop.eup %2208 }
0x139b   :  { %v2211_v44 = vpop.eup %2210  ;;  %1134 = vrot.lane.b32.xlu0 %v2209_v43, %s2308_s2 }
0x139c   :  { %1119 = vrot.lane.b32.xlu1 %v2211_v44, %s2304_s5 }
0x140d   :  { %v1135_v45 = vpop.permute.xlu0 %1134 }
0x140e   :  { %v1137_v46 = vsub.f32 %v2700_v27, %v1135_v45  ;;  %v1120_v47 = vpop.permute.xlu1 %1119 }
0x140f   :  { %v1122_v50 = vsub.f32 %v2700_v27, %v1120_v47 }
0x1410   :  { %1139 = vrot.lane.b32.xlu0 %v1137_v46, %s2309_s25 }
0x1411   :  { %1124 = vrot.lane.b32.xlu1 %v1122_v50, %s2307_s24 }
0x1414   :  { %1154 = vperm.xlu0 %2138, %v2728_v15  }
0x1418   :  { %1148 = vrot.lane.b32.xlu0 %v2700_v27, %s2308_s2 }
0x1482   :  { %v1140_v16 = vpop.permute.xlu0 %1139 }
0x1483   :  { %v1142_v51 = vmul.f32 %v2207_v37, %v1140_v16  ;;  %v1125_v23 = vpop.permute.xlu1 %1124 }
0x1484   :  { %v1127_v52 = vmul.f32 %v2205_v25, %v1125_v23 }
0x1485   :  { %1144 = vrot.lane.b32.xlu1 %v1142_v51, %s2307_s24 }
0x1489   :  { %1129 = vrot.lane.b32.xlu1 %v1127_v52, %s2307_s24 }
0x1493   :  { %v1155_v53 = vpop.permute.xlu0 %1154 }
0x1497   :  { %v1149_v56 = vpop.permute.xlu0 %1148 }
0x14f7   :  { %v1145_v54 = vpop.permute.xlu1 %1144 }
0x14f8   :  { %v1147_v55 = vadd.f32 %v2209_v43, %v1145_v54 }
0x14fa   :  { %v1151_v57 = vsub.f32 %v1147_v55, %v1149_v56 }
0x14fb   :  { %v1130_v58 = vpop.permute.xlu1 %1129 }
0x14fc   :  { %v1132_v59 = vadd.f32 %v2211_v44, %v1130_v58  ;;  %v1157_v60 = vmul.f32 %v1155_v53, %v1151_v57 }
0x14fe   :  { %1159 = vrot.lane.b32.xlu0 %v1157_v60, %s2308_s2  ;;  %1164 = vrot.lane.b32.xlu1 %v1132_v59, %s2304_s5 }
0x1570   :  { %v1160_v61 = vpop.permute.xlu0 %1159  ;;  %v2740_v6 = vpop.permute.xlu1 %1164 }
0x1571   :  { %v2738_v62 = vadd.f32 %v1160_v61, %v2700_v27 }
0x1573   :  { %v2745_v10 = vsel %vm61_vm0, %v2740_v6, %v2738_v62 }
0x1574   :  { %2031 = vmatmul.mubr.msk.f32.vlgmr.msra.gmra.mrb[8].mxu0 %vm197_vm2, %v2745_v10 }
0x1647   :  { %v1237_v28 = vpop.f32.mrb[8].mxu0 }
0x1648   :  { %v2032_v30 = vpop.f32.mrb[9].mxu0  ;;  %v1267_v20 = vadd.f32 %v1237_v28, %v2444_v24  ;;  %v1255_v34 = vadd.f32 %v1237_v28, %v2449_v29  ;;  %v1241_v27 = vadd.f32 %v1237_v28, %v2505_v14  ;;  %v1248_v8 = vadd.f32 %v1237_v28, %v2501_v13 }
0x164a   :  { %1269 = vrot.lane.b32.xlu0 %v1267_v20, %s2304_s5  ;;  %1257 = vrot.lane.b32.xlu1 %v1255_v34, %s2304_s5  ;;  %v1863_v35 = vmul.f32 -1.442695, %v1241_v27  ;;  %v1864_v18 = vmul.f32 -1.442695, %v1248_v8 }
0x164c   :  { %2212 = vpow2.f32 %v1863_v35 }
0x164d   :  { %2214 = vpow2.f32 %v1864_v18 }
0x1656   :  { %v2213_v12 = vpop.eup %2212 }
0x1657   :  { %v2215_v17 = vpop.eup %2214  ;;  %v1245_v36 = vadd.f32 1.0, %v2213_v12 }
0x1658   :  { %v1252_v63 = vadd.f32 1.0, %v2215_v17 }
0x1659   :  { %2216 = vrcp.f32 %v1245_v36 }
0x165a   :  { %2218 = vrcp.f32 %v1252_v63 }
0x1663   :  { %v2217_v25 = vpop.eup %2216 }
0x1664   :  { %v2219_v37 = vpop.eup %2218 }
0x16bc   :  { %v1270_v19 = vpop.permute.xlu0 %1269  ;;  %v1258_v21 = vpop.permute.xlu1 %1257 }
0x16bd   :  { %v1272_v31 = vmul.f32 %v2219_v37, %v1270_v19  ;;  %v1260_v38 = vmul.f32 %v2217_v25, %v1258_v21 }
0x16bf   :  { %1274 = vrot.lane.b32.xlu0 %v1272_v31, %s2301_s3  ;;  %1262 = vrot.lane.b32.xlu1 %v1260_v38, %s2301_s3 }
0x1731   :  { %v1275_v39 = vpop.permute.xlu0 %1274  ;;  %v1263_v40 = vpop.permute.xlu1 %1262 }
0x1732   :  { %v1277_v41 = vadd.f32 %v1275_v39, %v2501_v13  ;;  %v1265_v42 = vadd.f32 %v1263_v40, %v2505_v14  ;;  %v2768_v13 = vld [vmem:[%s2940_s1 + $0x8] sm:$0xff] }
0x1733   :  { %vm1687_vm4 = vcmp.gt.f32.partialorder %v2768_v13, 0.5 }
0x1734   :  { %2220 = vtanh.f32 %v1277_v41 }
0x1735   :  { %2222 = vtanh.f32 %v1265_v42 }
0x173e   :  { %v2221_v43 = vpop.eup %2220 }
0x173f   :  { %v2223_v44 = vpop.eup %2222  ;;  %1295 = vrot.lane.b32.xlu0 %v2221_v43, %s2308_s2 }
0x1740   :  { %1280 = vrot.lane.b32.xlu1 %v2223_v44, %s2304_s5 }
0x17b1   :  { %v1296_v45 = vpop.permute.xlu0 %1295 }
0x17b2   :  { %v1298_v46 = vsub.f32 %v2745_v10, %v1296_v45  ;;  %v1281_v47 = vpop.permute.xlu1 %1280 }
0x17b3   :  { %v1283_v50 = vsub.f32 %v2745_v10, %v1281_v47 }
0x17b4   :  { %1300 = vrot.lane.b32.xlu0 %v1298_v46, %s2309_s25 }
0x17b5   :  { %1285 = vrot.lane.b32.xlu1 %v1283_v50, %s2307_s24  ;;  %v1498_v50 = vld [vmem:[%s2946_s7 + $0x8] sm:$0xff] }
0x17b8   :  { %1315 = vperm.xlu0 %2138, %v2768_v13  }
0x17bc   :  { %1309 = vrot.lane.b32.xlu0 %v2745_v10, %s2308_s2 }
0x1826   :  { %v1301_v14 = vpop.permute.xlu0 %1300 }
0x1827   :  { %v1303_v16 = vmul.f32 %v2219_v37, %v1301_v14  ;;  %v1286_v51 = vpop.permute.xlu1 %1285 }
0x1828   :  { %v1288_v23 = vmul.f32 %v2217_v25, %v1286_v51 }
0x1829   :  { %1305 = vrot.lane.b32.xlu1 %v1303_v16, %s2307_s24 }
0x182d   :  { %1290 = vrot.lane.b32.xlu1 %v1288_v23, %s2307_s24 }
0x1837   :  { %v1316_v52 = vpop.permute.xlu0 %1315 }
0x183b   :  { %v1310_v55 = vpop.permute.xlu0 %1309 }
0x189b   :  { %v1306_v53 = vpop.permute.xlu1 %1305 }
0x189c   :  { %v1308_v54 = vadd.f32 %v2221_v43, %v1306_v53  ;;  %v1499_v53 = vld [vmem:[%s2946_s7 + $0x10] sm:$0xff] }
0x189e   :  { %v1312_v56 = vsub.f32 %v1308_v54, %v1310_v55  ;;  %v1500_v54 = vld [vmem:[%s2946_s7 + $0x18] sm:$0xff] }
0x189f   :  { %v1291_v57 = vpop.permute.xlu1 %1290  ;;  %v2120_v55 = vpack.c.bf16 %v1500_v54, %v1499_v53 }
0x18a0   :  { %v1293_v58 = vadd.f32 %v2223_v44, %v1291_v57  ;;  %v1318_v59 = vmul.f32 %v1316_v52, %v1312_v56 }
0x18a2   :  { %1320 = vrot.lane.b32.xlu0 %v1318_v59, %s2308_s2  ;;  %1325 = vrot.lane.b32.xlu1 %v1293_v58, %s2304_s5 }
0x1914   :  { %v1321_v60 = vpop.permute.xlu0 %1320  ;;  %v2780_v28 = vpop.permute.xlu1 %1325 }
0x1915   :  { %v2778_v61 = vadd.f32 %v1321_v60, %v2745_v10 }
0x1917   :  { %v2785_v30 = vsel %vm61_vm0, %v2780_v28, %v2778_v61 }
0x1918   :  { %2042 = vmatmul.mubr.msk.f32.vlgmr.msra.gmra.mrb[12].mxu1 %vm197_vm2, %v2785_v30 }
0x19eb   :  { %v1398_v20 = vpop.f32.mrb[12].mxu1 }
0x19ec   :  { %v1416_v34 = vadd.f32 %v1398_v20, %v2449_v29  ;;  %v2043_v27 = vpop.f32.mrb[13].mxu1  ;;  %v1428_v8 = vadd.f32 %v1398_v20, %v2444_v24  ;;  %v1402_v10 = vadd.f32 %v1398_v20, %v2460_v32  ;;  %v1409_v35 = vadd.f32 %v1398_v20, %v2463_v33 }
0x19ee   :  { %1430 = vrot.lane.b32.xlu0 %v1428_v8, %s2304_s5  ;;  %1418 = vrot.lane.b32.xlu1 %v1416_v34, %s2304_s5  ;;  %v1866_v18 = vmul.f32 -1.442695, %v1402_v10  ;;  %v1867_v12 = vmul.f32 -1.442695, %v1409_v35 }
0x19f0   :  { %2224 = vpow2.f32 %v1866_v18  ;;  %v2837_v18 = vsel %vm61_vm0, %v2543_v3, %v2778_v61  ;;  %v2858_v3 = vsel %vm61_vm0, %v2695_v26, %v2648_v7 }
0x19f1   :  { %2226 = vpow2.f32 %v1867_v12  ;;  %v2846_v12 = vsel %vm61_vm0, %v2596_v1, %v2738_v62  ;;  %v2867_v1 = vsel %vm61_vm0, %v2740_v6, %v2594_v0  ;;  %v1868_v0 = vld [vmem:[%s2947_s8] ss:$0 sm:$0xff] }
0x19fa   :  { %v2225_v17 = vpop.eup %2224 }
0x19fb   :  { %v2227_v36 = vpop.eup %2226  ;;  %v1406_v63 = vadd.f32 1.0, %v2225_v17 }
0x19fc   :  { %v1413_v25 = vadd.f32 1.0, %v2227_v36 }
0x19fd   :  { %2228 = vrcp.f32 %v1406_v63 }
0x19fe   :  { %2230 = vrcp.f32 %v1413_v25 }
0x1a07   :  { %v2229_v29 = vpop.eup %2228 }
0x1a08   :  { %v2231_v24 = vpop.eup %2230 }
0x1a60   :  { %v1431_v37 = vpop.permute.xlu0 %1430  ;;  %v1419_v19 = vpop.permute.xlu1 %1418 }
0x1a61   :  { %v1433_v21 = vmul.f32 %v2231_v24, %v1431_v37  ;;  %v1421_v31 = vmul.f32 %v2229_v29, %v1419_v19 }
0x1a63   :  { %1435 = vrot.lane.b32.xlu0 %v1433_v21, %s2301_s3  ;;  %1423 = vrot.lane.b32.xlu1 %v1421_v31, %s2301_s3 }
0x1ad5   :  { %v1436_v38 = vpop.permute.xlu0 %1435  ;;  %v1424_v39 = vpop.permute.xlu1 %1423 }
0x1ad6   :  { %v1438_v40 = vadd.f32 %v1436_v38, %v2463_v33  ;;  %v1426_v41 = vadd.f32 %v1424_v39, %v2460_v32  ;;  %v2808_v32 = vld [vmem:[%s2940_s1] sm:$0xff] }
0x1ad7   :  { %v1497_v33 = vld [vmem:[%s2946_s7] sm:$0xff]  ;;  %vm1684_vm3 = vcmp.gt.f32.partialorder %v2808_v32, 0.5 }
0x1ad8   :  { %2232 = vtanh.f32 %v1438_v40  ;;  %v2116_v14 = vpack.c.bf16 %v1498_v50, %v1497_v33 }
0x1ad9   :  { %2234 = vtanh.f32 %v1426_v41 }
0x1ada   :  { %2117 = vmatprep.subr.bf16.mxu0 %v2116_v14 }
0x1adb   :  { %2119 = vmatpush3.bf16.msra.mxu0 %v2116_v14 }
0x1adc   :  { %2121 = vmatprep.subr.bf16.mxu0 %v2120_v55 }
0x1adf   :  { %2123 = vmatpush3.bf16.msra.mxu0 %v2120_v55 }
0x1ae2   :  { %v2233_v42 = vpop.eup %2232 }
0x1ae3   :  { %v2235_v43 = vpop.eup %2234  ;;  %1456 = vrot.lane.b32.xlu0 %v2233_v42, %s2308_s2 }
0x1ae4   :  { %1441 = vrot.lane.b32.xlu1 %v2235_v43, %s2304_s5 }
0x1b55   :  { %v1457_v44 = vpop.permute.xlu0 %1456 }
0x1b56   :  { %v1459_v45 = vsub.f32 %v2785_v30, %v1457_v44  ;;  %v1442_v46 = vpop.permute.xlu1 %1441 }
0x1b57   :  { %v1444_v47 = vsub.f32 %v2785_v30, %v1442_v46 }
0x1b58   :  { %1461 = vrot.lane.b32.xlu0 %v1459_v45, %s2309_s25 }
0x1b59   :  { %1446 = vrot.lane.b32.xlu1 %v1444_v47, %s2307_s24 }
0x1b5c   :  { %1476 = vperm.xlu0 %2138, %v2808_v32  }
0x1b60   :  { %1470 = vrot.lane.b32.xlu0 %v2785_v30, %s2308_s2 }
0x1bca   :  { %v1462_v16 = vpop.permute.xlu0 %1461 }
0x1bcb   :  { %v1464_v51 = vmul.f32 %v2231_v24, %v1462_v16  ;;  %v1447_v23 = vpop.permute.xlu1 %1446 }
0x1bcc   :  { %v1449_v52 = vmul.f32 %v2229_v29, %v1447_v23  ;;  %v1877_v29 = vld [vmem:[%s2948_s9] ss:$0 sm:$0xff] }
0x1bcd   :  { %1466 = vrot.lane.b32.xlu1 %v1464_v51, %s2307_s24 }
0x1bd1   :  { %1451 = vrot.lane.b32.xlu1 %v1449_v52, %s2307_s24 }
0x1bdb   :  { %v1477_v56 = vpop.permute.xlu0 %1476 }
0x1bdf   :  { %v1471_v59 = vpop.permute.xlu0 %1470 }
0x1c3f   :  { %v1467_v57 = vpop.permute.xlu1 %1466 }
0x1c40   :  { %v1469_v58 = vadd.f32 %v2233_v42, %v1467_v57 }
0x1c42   :  { %v1473_v60 = vsub.f32 %v1469_v58, %v1471_v59 }
0x1c43   :  { %v1452_v20 = vpop.permute.xlu1 %1451 }
0x1c44   :  { %v1479_v34 = vmul.f32 %v1477_v56, %v1473_v60  ;;  %v1454_v27 = vadd.f32 %v2235_v43, %v1452_v20 }
0x1c46   :  { %1481 = vrot.lane.b32.xlu0 %v1479_v34, %s2308_s2  ;;  %1493 = vrot.lane.b32.xlu1 %v1454_v27, %s2304_s5 }
0x1cb8   :  { %v1482_v8 = vpop.permute.xlu0 %1481 }
0x1cb9   :  { %v1484_v10 = vadd.f32 %v1482_v8, %v2785_v30 }
0x1cbb   :  { %v2832_v35 = vsel %vm61_vm0, %v2480_v5, %v1484_v10  ;;  %v2853_v5 = vsel %vm61_vm0, %v2650_v9, %v2693_v11  ;;  %v2872_v9 = vsel %vm61_vm0, %v2780_v28, %v2541_v2  ;;  %v1494_v11 = vpop.permute.xlu1 %1493 }
0x1cbc   :  { %2052 = vmatprep.mubr.msk.f32.mxu0 %vm197_vm2, %v2832_v35  ;;  %v2880_v7 = vsel %vm61_vm0, %v1494_v11, %v2478_v4 }
0x1cbd   :  { %2053 = vmatmul.mubr.msk.f32.vlgmr.msra.gmra.mrb[10].mxu0 %vm197_vm2, %v2837_v18 }
0x1cbe   :  { %2055 = vmatprep.mubr.msk.f32.mxu0 %vm197_vm2, %v2846_v12 }
0x1cc1   :  { %2056 = vmatmul.mubr.msk.f32.gmra.mrb[12].mxu0 %vm197_vm2, %v2853_v5 }
0x1cc2   :  { %2058 = vmatprep.mubr.msk.f32.mxu0 %vm197_vm2, %v2858_v3 }
0x1cc5   :  { %2059 = vmatmul.mubr.msk.f32.gmra.mrb[14].mxu0 %vm197_vm2, %v2867_v1 }
0x1cc6   :  { %2061 = vmatprep.mubr.msk.f32.mxu0 %vm197_vm2, %v2872_v9 }
0x1cc9   :  { %2062 = vmatmul.mubr.msk.f32.gmra.mrb[16].mxu0 %vm197_vm2, %v2880_v7 }
0x1d90   :  { %v2054_v2 = vpop.f32.mrb[10].mxu0 }
0x1d91   :  { %v1604_v26 = vadd.f32 %v2054_v2, %v1868_v0  ;;  %v1598_v62 = vpop.f32.mrb[11].mxu0 }
0x1d92   :  { %v1599_v6 = vadd.f32 %v1868_v0, %v1598_v62 }
0x1d93   :  { %2236 = vtanh.f32 %v1604_v26 }
0x1d94   :  { %2238 = vtanh.f32 %v1599_v6  ;;  %v2057_v61 = vpop.f32.mrb[12].mxu0 }
0x1d95   :  { %v1614_v28 = vadd.f32 %v2057_v61, %v1868_v0  ;;  %v1608_v30 = vpop.f32.mrb[13].mxu0 }
0x1d96   :  { %v1609_v17 = vadd.f32 %v1868_v0, %v1608_v30 }
0x1d97   :  { %2240 = vtanh.f32 %v1614_v28 }
0x1d98   :  { %2242 = vtanh.f32 %v1609_v17  ;;  %v2060_v4 = vpop.f32.mrb[14].mxu0  ;;  %v2272_v17 = vld [vmem:[%s2940_s1 + $0x30] sm:$0xff] }
0x1d99   :  { %v1624_v36 = vadd.f32 %v2060_v4, %v1868_v0  ;;  %v1618_v63 = vpop.f32.mrb[15].mxu0  ;;  %vm1702_vm9 = vcmp.gt.f32.partialorder %v2272_v17, 0.5 }
0x1d9a   :  { %v1619_v25 = vadd.f32 %v1868_v0, %v1618_v63 }
0x1d9b   :  { %2244 = vtanh.f32 %v1624_v36 }
0x1d9c   :  { %2246 = vtanh.f32 %v1619_v25  ;;  %v2063_v24 = vpop.f32.mrb[16].mxu0  ;;  %v2273_v25 = vld [vmem:[%s2940_s1 + $0x38] sm:$0xff] }
0x1d9d   :  { %v2237_v37 = vpop.eup %2236  ;;  %v1634_v19 = vadd.f32 %v2063_v24, %v1868_v0  ;;  %v1628_v21 = vpop.f32.mrb[17].mxu0  ;;  %vm1705_vm10 = vcmp.gt.f32.partialorder %v2273_v25, 0.5 }
0x1d9e   :  { %v2239_v31 = vpop.eup %2238  ;;  %v1629_v38 = vadd.f32 %v1868_v0, %v1628_v21  ;;  %v1653_v39 = vmul.f32 %v2237_v37, %v1877_v29 }
0x1d9f   :  { %2248 = vtanh.f32 %v1634_v19  ;;  %v1652_v40 = vmul.f32 %v2239_v31, %v1877_v29 }
0x1da0   :  { %2250 = vtanh.f32 %v1629_v38  ;;  %v1663_v41 = vsel %vm197_vm2, %v1653_v39, 0.0 }
0x1da1   :  { %v2241_v42 = vpop.eup %2240  ;;  %1664 = vadd.xlane.f32.xlu1 %v1663_v41  ;;  %v1660_v43 = vsel %vm197_vm2, %v1652_v40, 0.0 }
0x1da2   :  { %v2243_v44 = vpop.eup %2242  ;;  %1661 = vadd.xlane.f32.xlu0 %v1660_v43  ;;  %v1655_v33 = vmul.f32 %v2241_v42, %v1877_v29 }
0x1da3   :  { %v1654_v45 = vmul.f32 %v2243_v44, %v1877_v29 }
0x1da4   :  { %v1669_v51 = vsel %vm197_vm2, %v1655_v33, 0.0 }
0x1da5   :  { %v2245_v46 = vpop.eup %2244  ;;  %v1666_v47 = vsel %vm197_vm2, %v1654_v45, 0.0 }
0x1da6   :  { %v2247_v50 = vpop.eup %2246  ;;  %1667 = vadd.xlane.f32.xlu0 %v1666_v47  ;;  %v1657_v52 = vmul.f32 %v2245_v46, %v1877_v29 }
0x1da7   :  { %v1656_v14 = vmul.f32 %v2247_v50, %v1877_v29 }
0x1da8   :  { %v1675_v55 = vsel %vm197_vm2, %v1657_v52, 0.0 }
0x1da9   :  { %v2249_v16 = vpop.eup %2248  ;;  %v1672_v23 = vsel %vm197_vm2, %v1656_v14, 0.0 }
0x1daa   :  { %v2251_v53 = vpop.eup %2250  ;;  %1670 = vadd.xlane.f32.xlu0 %v1669_v51  ;;  %1673 = vadd.xlane.f32.xlu1 %v1672_v23  ;;  %v1659_v57 = vmul.f32 %v2249_v16, %v1877_v29 }
0x1dab   :  { %v1658_v54 = vmul.f32 %v2251_v53, %v1877_v29 }
0x1dac   :  { %v1681_v58 = vsel %vm197_vm2, %v1659_v57, 0.0 }
0x1dad   :  { %v1678_v56 = vsel %vm197_vm2, %v1658_v54, 0.0 }
0x1dae   :  { %1676 = vadd.xlane.f32.xlu0 %v1675_v55  ;;  %1679 = vadd.xlane.f32.xlu1 %v1678_v56 }
0x1db2   :  { %1682 = vadd.xlane.f32.xlu0 %v1681_v58 }
0x1e2e   :  { %v1665_v59 = vpop.xlane.xlu1 %1664 }
0x1e2f   :  { %v1662_v60 = vpop.xlane.xlu0 %1661  ;;  %v1688_v27 = vsel %vm1687_vm4, %v1665_v59, -1e+30 }
0x1e30   :  { %v1685_v20 = vsel %vm1684_vm3, %v1662_v60, -1e+30 }
0x1e31   :  { %v1686_v34 = vmax.f32 %v1685_v20, 0.0 }
0x1e33   :  { %v1689_v8 = vmax.f32 %v1686_v34, %v1688_v27  ;;  %v1668_v10 = vpop.xlane.xlu0 %1667 }
0x1e34   :  { %v1691_v11 = vsel %vm1690_vm5, %v1668_v10, -1e+30 }
0x1e35   :  { %v1692_v0 = vmax.f32 %v1689_v8, %v1691_v11 }
0x1e37   :  { %v1671_v2 = vpop.xlane.xlu0 %1670  ;;  %v1674_v26 = vpop.xlane.xlu1 %1673 }
0x1e38   :  { %v1694_v62 = vsel %vm1693_vm6, %v1671_v2, -1e+30  ;;  %v1697_v61 = vsel %vm1696_vm7, %v1674_v26, -1e+30 }
0x1e39   :  { %v1695_v6 = vmax.f32 %v1692_v0, %v1694_v62 }
0x1e3b   :  { %v1698_v28 = vmax.f32 %v1695_v6, %v1697_v61  ;;  %v1677_v30 = vpop.xlane.xlu0 %1676  ;;  %v1680_v4 = vpop.xlane.xlu1 %1679 }
0x1e3c   :  { %v1700_v36 = vsel %vm1699_vm8, %v1677_v30, -1e+30  ;;  %v1703_v29 = vsel %vm1702_vm9, %v1680_v4, -1e+30 }
0x1e3d   :  { %v1701_v63 = vmax.f32 %v1698_v28, %v1700_v36 }
0x1e3f   :  { %v1704_v24 = vmax.f32 %v1701_v63, %v1703_v29  ;;  %v1683_v37 = vpop.xlane.xlu0 %1682 }
0x1e40   :  { %v1706_v49 = vsel %vm1705_vm10, %v1683_v37, -1e+30 }
0x1e41   :  { %v1707_v19 = vmax.f32 %v1704_v24, %v1706_v49 }
0x1e43   :  { %v1720_v21 = vsub.f32 %v1665_v59, %v1707_v19  ;;  %v1708_v31 = vsub.f32 %v1662_v60, %v1707_v19  ;;  %v1756_v38 = vsub.f32 %v1674_v26, %v1707_v19  ;;  %v1732_v39 = vsub.f32 %v1668_v10, %v1707_v19 }
0x1e44   :  { %v1744_v42 = vsub.f32 %v1671_v2, %v1707_v19  ;;  %v1780_v44 = vsub.f32 %v1680_v4, %v1707_v19  ;;  %v1768_v46 = vsub.f32 %v1677_v30, %v1707_v19  ;;  %v1792_v50 = vsub.f32 %v1683_v37, %v1707_v19 }
0x1e45   :  { %v1721_v40 = vmul.f32 1.442695, %v1720_v21  ;;  %v1709_v41 = vmul.f32 1.442695, %v1708_v31  ;;  %v1757_v43 = vmul.f32 1.442695, %v1756_v38 }
0x1e46   :  { %v1733_v45 = vmul.f32 1.442695, %v1732_v39  ;;  %v1745_v47 = vmul.f32 1.442695, %v1744_v42  ;;  %v1781_v33 = vmul.f32 1.442695, %v1780_v44 }
0x1e47   :  { %2252 = vpow2.f32 %v1721_v40  ;;  %v1769_v14 = vmul.f32 1.442695, %v1768_v46  ;;  %v1804_v16 = vsub.f32 0.0, %v1707_v19  ;;  %v1793_v51 = vmul.f32 1.442695, %v1792_v50 }
0x1e48   :  { %2254 = vpow2.f32 %v1709_v41 }
0x1e49   :  { %2256 = vpow2.f32 %v1757_v43  ;;  %v1805_v23 = vmul.f32 1.442695, %v1804_v16 }
0x1e4a   :  { %2258 = vpow2.f32 %v1733_v45 }
0x1e4b   :  { %2260 = vpow2.f32 %v1745_v47 }
0x1e4c   :  { %2262 = vpow2.f32 %v1781_v33 }
0x1e4d   :  { %2264 = vpow2.f32 %v1769_v14 }
0x1e4e   :  { %2266 = vpow2.f32 %v1793_v51 }
0x1e4f   :  { %2268 = vpow2.f32 %v1805_v23 }
0x1e51   :  { %v2253_v52 = vpop.eup %2252 }
0x1e52   :  { %v2255_v53 = vpop.eup %2254  ;;  %v1723_v54 = vmul.f32 %v2253_v52, %v2768_v13 }
0x1e53   :  { %v2257_v55 = vpop.eup %2256  ;;  %v1711_v56 = vmul.f32 %v2255_v53, %v2808_v32  ;;  %v2274_v32 = vld [vmem:[%s2940_s1 + $0x28] sm:$0xff]  ;;  %s2310_s1 = smov [#allocation2]  }
0x1e54   :  { %v2259_v57 = vpop.eup %2258  ;;  %1726 = vperm.xlu0 %2138, %v1723_v54   ;;  %v1759_v20 = vmul.f32 %v2257_v55, %v2638_v48  ;;  %s1826_s12 = sshll.u32 %s2310_s1, 4  ;;  %s1827_s12 = int_to_ptr.vmem [resolvable:$true] %s1826_s12 }
0x1e55   :  { %1714 = vperm.xlu1 %2139, %v1711_v56   ;;  %v1731_v58 = vadd.f32 %v1723_v54, %v1711_v56  ;;  %v1735_v59 = vmul.f32 %v2259_v57, %v2728_v15  ;;  %v2261_v60 = vpop.eup %2260  ;;  %s2275_s13 = scalar_lea.vmem %s1827_s12, 128  ;;  %p2280_p1 = scmp.lt.s32.totalorder %s1827_s12, %s1827_s12 }
0x1e56   :  { %v2263_v34 = vpop.eup %2262  ;;  %v1747_v8 = vmul.f32 %v2261_v60, %v2683_v22  ;;  %p2276_p0 = scmp.ne.s32.totalorder %s1827_s12, %s2275_s13  ;;  %p2281_p2 = scmp.lt.s32.totalorder %s2275_s13, %s2275_s13 }
0x1e57   :  { %v1743_v27 = vadd.f32 %v1735_v59, %v1731_v58  ;;  %v2265_v10 = vpop.eup %2264  ;;  %v1783_v11 = vmul.f32 %v2272_v17, %v2263_v34 }
0x1e58   :  { %1762 = vperm.xlu0 %2138, %v1759_v20   ;;  %v1771_v0 = vmul.f32 %v2274_v32, %v2265_v10  ;;  %v2267_v26 = vpop.eup %2266  ;;  %p2282_p3 = por %p2281_p2, %p2280_p1 }
0x1e59   :  { %1738 = vperm.xlu1 %2139, %v1735_v59   ;;  %v1755_v13 = vadd.f32 %v1747_v8, %v1743_v27  ;;  %v2269_v48 = vpop.eup %2268  ;;  %v1795_v62 = vmul.f32 %v2273_v25, %v2267_v26 }
0x1e5a   :  { %v1807_v22 = vmul.f32 0.0001, %v2269_v48  ;;  %p2283_p4 = pnand %p2282_p3, %p2276_p0 }
0x1e5b   :  { %v1767_v2 = vadd.f32 %v1759_v20, %v1755_v13 }
0x1e5c   :  { %1786 = vperm.xlu0 %2138, %v1783_v11  }
0x1e5d   :  { %1750 = vperm.xlu1 %2139, %v1747_v8   ;;  %v1779_v15 = vadd.f32 %v1771_v0, %v1767_v2 }
0x1e5f   :  { %v1791_v6 = vadd.f32 %v1783_v11, %v1779_v15 }
0x1e61   :  { %1774 = vperm.xlu1 %2139, %v1771_v0   ;;  %v1803_v61 = vadd.f32 %v1795_v62, %v1791_v6 }
0x1e63   :  { %v1808_v28 = vadd.f32 %v1807_v22, %v1803_v61 }
0x1e65   :  { %1798 = vperm.xlu1 %2139, %v1795_v62   ;;  %2270 = vrcp.f32 %v1808_v28 }
0x1e6f   :  { %v2271_v30 = vpop.eup %2270 }
0x1e70   :  { %v1810_v17 = vmul.f32 %v2271_v30, %v1808_v28 }
0x1e72   :  { %v1811_v4 = vsub.f32 2.0, %v1810_v17 }
0x1e74   :  { %v1812_v36 = vmul.f32 %v2271_v30, %v1811_v4 }
0x1e76   :  { %1815 = vperm.xlu0 %2138, %v1812_v36  }
0x1ed3   :  { %v1727_v24 = vpop.permute.xlu0 %1726 }
0x1ed4   :  { %v1715_v63 = vpop.permute.xlu1 %1714  ;;  %v1729_v37 = vmul.f32 %v1727_v24, %v2837_v18 }
0x1ed5   :  { %v1717_v49 = vmul.f32 %v1715_v63, %v2832_v35 }
0x1ed7   :  { %v1730_v21 = vadd.f32 %v1729_v37, %v1717_v49  ;;  %v1763_v39 = vpop.permute.xlu0 %1762 }
0x1ed8   :  { %v1739_v29 = vpop.permute.xlu1 %1738  ;;  %v1765_v42 = vmul.f32 %v1763_v39, %v2858_v3 }
0x1ed9   :  { %v1741_v19 = vmul.f32 %v1739_v29, %v2846_v12 }
0x1edb   :  { %v1742_v38 = vadd.f32 %v1741_v19, %v1730_v21  ;;  %v1787_v45 = vpop.permute.xlu0 %1786 }
0x1edc   :  { %v1751_v25 = vpop.permute.xlu1 %1750  ;;  %v1789_v35 = vmul.f32 %v1787_v45, %v2872_v9 }
0x1edd   :  { %v1753_v31 = vmul.f32 %v1751_v25, %v2853_v5 }
0x1edf   :  { %v1754_v40 = vadd.f32 %v1753_v31, %v1742_v38 }
0x1ee0   :  { %v1775_v41 = vpop.permute.xlu1 %1774 }
0x1ee1   :  { %v1766_v43 = vadd.f32 %v1765_v42, %v1754_v40  ;;  %v1777_v44 = vmul.f32 %v1775_v41, %v2867_v1 }
0x1ee3   :  { %v1778_v46 = vadd.f32 %v1777_v44, %v1766_v43 }
0x1ee4   :  { %v1799_v18 = vpop.permute.xlu1 %1798 }
0x1ee5   :  { %v1801_v47 = vmul.f32 %v1799_v18, %v2880_v7  ;;  %v1790_v12 = vadd.f32 %v1789_v35, %v1778_v46 }
0x1ee7   :  { %v1802_v5 = vadd.f32 %v1801_v47, %v1790_v12 }
0x1ef5   :  { %v1816_v33 = vpop.permute.xlu0 %1815 }
0x1ef6   :  { %v1818_v50 = vmul.f32 %v1816_v33, %v1802_v5 }
0x1ef8   :  { %1819 = vst.msk [vmem:[#allocation2] sm:$0xff] %vm197_vm2, %v1818_v50 }
0x1ef9   :  { %2286 = shalt.err (!%p2283_p4)
}
0x1efa   :  { %s2287_s16 = scalar_lea.hbm %s2949_s10, 128 }
0x1efb   :  { %p2288_p5 = scmp.ne.s32.totalorder %s2949_s10, %s2287_s16  ;;  %p2291_p6 = scmp.lt.u32.totalorder %s2287_s16, %s2949_s10 }
0x1efd   :  { %p2293_p7 = pnand %p2291_p6, %p2288_p5 }
0x1eff   :  { %2296 = shalt.err (!%p2293_p7)
}
0x1f00   :  { %1829 = dma.vmem_to_hbm [thread:$0]  %s1827_s12, 128, %s2949_s10, [#allocation3]  }
0x1f01   :  { %2297 = dma.done.wait [#allocation3], 128  }
0x1f02   :  { %2298 = vsyncadd [#allocation3], 4294967168 }
0x1f03   :  { %1833 = vsyncpa [#allocation3], 1 }

</bundles_post_ra>
